<compile_context>
chip_gen: v6e
topology: v6e:2x2x1
jax: 0.10.0
libtpu: 0.0.40
codegen_flags: <defaults>
</compile_context>

<pallas_src>
import functools

import jax
import jax.numpy as jnp
from jax.experimental import pallas as pl
from jax.experimental.pallas import tpu as pltpu

NEG_SLOPE = 0.01  # F.leaky_relu default negative_slope
LANE = 128
SUBLANE = 8


def _leaky_relu(x):
    return jnp.where(x > 0, x, NEG_SLOPE * x)


def _round_up(x, m):
    return (x + m - 1) // m * m


def ae_kernel(*refs, act_mask):
    """Full AE forward (encode + decode) for one batch tile, all in VMEM.

    refs = (x_ref, w0, b0, w1, b1, ..., w7, b7, out_ref).
    Each w_l is bf16 (di_pad, do_pad), each b_l is f32 (1, do_pad), both
    zero-padded to 128-lane multiples.  Zero padding is semantics-preserving:
    padded weight rows/cols and padded bias lanes are zero and
    leaky_relu(0) == 0, so padded lanes stay zero through the whole network.
    """
    x_ref, out_ref = refs[0], refs[-1]
    param_refs = refs[1:-1]
    n_layers = len(param_refs) // 2

    h = x_ref[...].astype(jnp.float32)
    for l in range(n_layers):
        w = param_refs[2 * l][...]        # bf16 (di_pad, do_pad)
        b = param_refs[2 * l + 1][...]    # f32  (1, do_pad)
        h = jnp.dot(h.astype(jnp.bfloat16), w,
                    preferred_element_type=jnp.float32) + b
        if act_mask[l]:                   # en4 / de4 have no activation
            h = _leaky_relu(h)
    out_ref[...] = h.astype(out_ref.dtype)


def prepare_params(params):
    """One-time packing: pad each layer to lane-aligned shapes; weights -> bf16.

    Hoisted out of the per-call path so the pad/scatter ops do not run on
    every forward (they dominated the small-batch latency before).
    """
    packed = []
    for w, b in params:
        di, do = w.shape
        dip, dop = _round_up(di, LANE), _round_up(do, LANE)
        wp = jnp.zeros((dip, dop), jnp.bfloat16).at[:di, :do].set(
            jnp.asarray(w, jnp.bfloat16))
        bp = jnp.zeros((1, dop), jnp.float32).at[:, :do].set(
            jnp.asarray(b, jnp.float32).reshape(1, -1))
        packed.append((wp, bp))
    return packed


def _choose_tb(batch):
    """Batch tile: one step for tiny batches; otherwise an even number of
    ~<=512-row steps so the 'parallel' grid axis splits cleanly across the two
    v7x TensorCores and tiles stay large on v5e/v6e."""
    if batch <= 64:
        return _round_up(batch, SUBLANE)
    n = pl.cdiv(batch, 512)
    if n == 1:
        n = 2
    elif n % 2:
        n += 1
    return _round_up(pl.cdiv(batch, n), SUBLANE)


def ae_forward(x, packed, *, tb=None):
    B, F = x.shape
    n_layers = len(packed)
    F_in_pad = packed[0][0].shape[0]
    F_out_pad = packed[-1][0].shape[1]
    assert F <= F_in_pad and F <= F_out_pad

    # Only pad features when F is not lane-aligned (padded lanes must be
    # exactly zero so garbage never reaches the matmul).  For lane-aligned F
    # (the common case) x is passed straight through: no extra HBM copy.
    if F % LANE == 0:
        x_in = x
    else:
        x_in = jnp.zeros((B, F_in_pad), x.dtype).at[:, :F].set(x)
    Fx = x_in.shape[1]

    if tb is None:
        tb = _choose_tb(B)
    grid = (pl.cdiv(B, tb),)   # ragged last tile: OOB rows are don't-care,
                               # dropped by the masked output store.

    act_mask = tuple(l not in (3, n_layers - 1) for l in range(n_layers))
    kernel = functools.partial(ae_kernel, act_mask=act_mask)

    flat_params = tuple(p for wb in packed for p in wb)
    param_bytes = sum(p.size * p.dtype.itemsize for p in flat_params)
    flops = 2 * B * sum(w.shape[0] * w.shape[1] for w, _ in packed)
    bytes_accessed = (x_in.size * x_in.dtype.itemsize + param_bytes
                      + B * F * x.dtype.itemsize)
    cost = pl.CostEstimate(flops=flops, transcendentals=0,
                           bytes_accessed=bytes_accessed)

    # Rough VMEM need: double-buffered x/out tiles + (possibly double-buffered)
    # resident params.  Only raise the scoped limit when we actually need to.
    vmem_need = 2 * 4 * tb * (Fx + F_out_pad) + 2 * param_bytes + (2 << 20)
    vmem_limit = int(min(vmem_need, 96 << 20)) if vmem_need > (16 << 20) else None

    def make_call(single_buffer_params):
        pm = pl.Buffered(1) if single_buffer_params else None
        in_specs = [pl.BlockSpec((tb, Fx), lambda i: (i, 0))]
        for p in flat_params:
            # Grid-invariant blocks: same block every step, so Pallas does not
            # re-DMA them across grid iterations.
            in_specs.append(
                pl.BlockSpec(p.shape, lambda i: (0, 0), pipeline_mode=pm))
        return pl.pallas_call(
            kernel,
            out_shape=jax.ShapeDtypeStruct((B, F), x.dtype),
            grid_spec=pltpu.PrefetchScalarGridSpec(
                num_scalar_prefetch=0,
                grid=grid,
                in_specs=in_specs,
                out_specs=pl.BlockSpec((tb, F_out_pad), lambda i: (i, 0)),
            ),
            compiler_params=pltpu.CompilerParams(
                dimension_semantics=("parallel",),
                vmem_limit_bytes=vmem_limit),
            cost_estimate=cost,
        )

    try:
        return make_call(True)(x_in, *flat_params)
    except Exception:
        # TODO(synk): single-buffering the grid-invariant params via
        # pl.Buffered(1) is best-effort; fall back to default double-buffering
        # if this Pallas build rejects buffer_count=1.
        return make_call(False)(x_in, *flat_params)


def init_params(key, n_features, z_dim, dtype=jnp.float32):
    """Deterministic synthetic init mimicking nn.Linear's U(-1/sqrt(in), 1/sqrt(in))."""
    dims = [n_features, 200, 100, 50, z_dim, 50, 100, 200, n_features]
    params = []
    keys = jax.random.split(key, len(dims) - 1)
    for k, (din, dout) in zip(keys, zip(dims[:-1], dims[1:])):
        bound = 1.0 / (din ** 0.5)
        kw, kb = jax.random.split(k)
        w = jax.random.uniform(kw, (din, dout), dtype, -bound, bound)
        b = jax.random.uniform(kb, (1, dout), dtype, -bound, bound)
        params.append((w, b))
    return params


def ae_reference(x, params):
    """Pure-JAX f32 reference of the PyTorch forward (leaky_relu on all but en4/de4)."""
    h = x.astype(jnp.float32)
    for i, (w, b) in enumerate(params):
        h = h @ w.astype(jnp.float32) + b.reshape(1, -1).astype(jnp.float32)
        if i not in (3, len(params) - 1):
            h = _leaky_relu(h)
    return h


if __name__ == "__main__":
    batch = 16
    n_features = 128
    z_dim = 8

    key = jax.random.PRNGKey(0)
    kx, kp = jax.random.split(key)
    x = jax.random.normal(kx, (batch, n_features), dtype=jnp.float32)
    params = init_params(kp, n_features, z_dim)

    packed = prepare_params(params)        # one-time packing, reused per call
    out = jax.block_until_ready(ae_forward(x, packed))

    ref = ae_reference(x, params)
    assert out.shape == (batch, n_features), out.shape
    err = float(jnp.max(jnp.abs(out.astype(jnp.float32) - ref)))
    scale = float(jnp.max(jnp.abs(ref)))
    # bf16 weights/activations vs f32 reference: loosened tolerance (module is
    # f64 in PyTorch, so f32/bf16 is already an approximation).
    assert err <= 5e-2 * scale + 5e-2, (err, scale)

    print("KERNEL_OK")
</pallas_src>

<mosaic_0001>
module attributes {stable_mosaic.version = 11 : i64} {
  func.func @ae_kernel(%arg0: i32, %arg1: memref<16x128xf32, #tpu.memory_space<vmem>>, %arg2: memref<128x256xbf16, #tpu.memory_space<vmem>>, %arg3: memref<1x256xf32, #tpu.memory_space<vmem>>, %arg4: memref<256x128xbf16, #tpu.memory_space<vmem>>, %arg5: memref<1x128xf32, #tpu.memory_space<vmem>>, %arg6: memref<128x128xbf16, #tpu.memory_space<vmem>>, %arg7: memref<1x128xf32, #tpu.memory_space<vmem>>, %arg8: memref<128x128xbf16, #tpu.memory_space<vmem>>, %arg9: memref<1x128xf32, #tpu.memory_space<vmem>>, %arg10: memref<128x128xbf16, #tpu.memory_space<vmem>>, %arg11: memref<1x128xf32, #tpu.memory_space<vmem>>, %arg12: memref<128x128xbf16, #tpu.memory_space<vmem>>, %arg13: memref<1x128xf32, #tpu.memory_space<vmem>>, %arg14: memref<128x256xbf16, #tpu.memory_space<vmem>>, %arg15: memref<1x256xf32, #tpu.memory_space<vmem>>, %arg16: memref<256x128xbf16, #tpu.memory_space<vmem>>, %arg17: memref<1x128xf32, #tpu.memory_space<vmem>>, %arg18: memref<16x128xf32, #tpu.memory_space<vmem>>) attributes {dimension_semantics = [#tpu.dimension_semantics<parallel>], iteration_bounds = array<i64: 1>, scalar_prefetch = 0 : i64, scratch_operands = 0 : i64, tpu.core_type = #tpu.core_type<tc>, window_params = [{transform_indices = @transform_0, window_bounds = array<i64: 16, 128>}, {pipeline_mode = #tpu.pipeline_mode<synchronous>, transform_indices = @transform_1, window_bounds = array<i64: 128, 256>}, {pipeline_mode = #tpu.pipeline_mode<synchronous>, transform_indices = @transform_2, window_bounds = array<i64: 1, 256>}, {pipeline_mode = #tpu.pipeline_mode<synchronous>, transform_indices = @transform_3, window_bounds = array<i64: 256, 128>}, {pipeline_mode = #tpu.pipeline_mode<synchronous>, transform_indices = @transform_4, window_bounds = array<i64: 1, 128>}, {pipeline_mode = #tpu.pipeline_mode<synchronous>, transform_indices = @transform_5, window_bounds = array<i64: 128, 128>}, {pipeline_mode = #tpu.pipeline_mode<synchronous>, transform_indices = @transform_6, window_bounds = array<i64: 1, 128>}, {pipeline_mode = #tpu.pipeline_mode<synchronous>, transform_indices = @transform_7, window_bounds = array<i64: 128, 128>}, {pipeline_mode = #tpu.pipeline_mode<synchronous>, transform_indices = @transform_8, window_bounds = array<i64: 1, 128>}, {pipeline_mode = #tpu.pipeline_mode<synchronous>, transform_indices = @transform_9, window_bounds = array<i64: 128, 128>}, {pipeline_mode = #tpu.pipeline_mode<synchronous>, transform_indices = @transform_10, window_bounds = array<i64: 1, 128>}, {pipeline_mode = #tpu.pipeline_mode<synchronous>, transform_indices = @transform_11, window_bounds = array<i64: 128, 128>}, {pipeline_mode = #tpu.pipeline_mode<synchronous>, transform_indices = @transform_12, window_bounds = array<i64: 1, 128>}, {pipeline_mode = #tpu.pipeline_mode<synchronous>, transform_indices = @transform_13, window_bounds = array<i64: 128, 256>}, {pipeline_mode = #tpu.pipeline_mode<synchronous>, transform_indices = @transform_14, window_bounds = array<i64: 1, 256>}, {pipeline_mode = #tpu.pipeline_mode<synchronous>, transform_indices = @transform_15, window_bounds = array<i64: 256, 128>}, {pipeline_mode = #tpu.pipeline_mode<synchronous>, transform_indices = @transform_16, window_bounds = array<i64: 1, 128>}, {transform_indices = @transform_17, window_bounds = array<i64: 16, 128>}]} {
    %c0 = arith.constant 0 : index
    %c0_0 = arith.constant 0 : index
    %0 = vector.load %arg1[%c0, %c0_0] : memref<16x128xf32, #tpu.memory_space<vmem>>, vector<16x128xf32>
    %c0_1 = arith.constant 0 : index
    %c0_2 = arith.constant 0 : index
    %1 = vector.load %arg2[%c0_1, %c0_2] : memref<128x256xbf16, #tpu.memory_space<vmem>>, vector<128x256xbf16>
    %c0_3 = arith.constant 0 : index
    %c0_4 = arith.constant 0 : index
    %2 = vector.load %arg3[%c0_3, %c0_4] : memref<1x256xf32, #tpu.memory_space<vmem>>, vector<1x256xf32>
    %3 = arith.truncf %0 : vector<16x128xf32> to vector<16x128xbf16>
    %cst = arith.constant dense<0.000000e+00> : vector<16x256xf32>
    %4 = tpu.matmul %3, %1, %cst {dimension_numbers = #tpu.dot_dimension_numbers<[1], [0], [0], [1], [0, 0, 1, 1], [], []>} : vector<16x128xbf16>, vector<128x256xbf16>, vector<16x256xf32> -> vector<16x256xf32>
    %5 = vector.broadcast %2 : vector<1x256xf32> to vector<16x256xf32>
    %6 = arith.addf %4, %5 : vector<16x256xf32>
    %cst_5 = arith.constant 0.000000e+00 : f32
    %7 = vector.broadcast %cst_5 : f32 to vector<16x256xf32>
    %8 = arith.cmpf ogt, %6, %7 : vector<16x256xf32>
    %cst_6 = arith.constant 0.00999999977 : f32
    %9 = vector.broadcast %cst_6 : f32 to vector<16x256xf32>
    %10 = arith.mulf %9, %6 : vector<16x256xf32>
    %11 = arith.select %8, %6, %10 : vector<16x256xi1>, vector<16x256xf32>
    %c0_7 = arith.constant 0 : index
    %c0_8 = arith.constant 0 : index
    %12 = vector.load %arg4[%c0_7, %c0_8] : memref<256x128xbf16, #tpu.memory_space<vmem>>, vector<256x128xbf16>
    %c0_9 = arith.constant 0 : index
    %c0_10 = arith.constant 0 : index
    %13 = vector.load %arg5[%c0_9, %c0_10] : memref<1x128xf32, #tpu.memory_space<vmem>>, vector<1x128xf32>
    %14 = arith.truncf %11 : vector<16x256xf32> to vector<16x256xbf16>
    %cst_11 = arith.constant dense<0.000000e+00> : vector<16x128xf32>
    %15 = tpu.matmul %14, %12, %cst_11 {dimension_numbers = #tpu.dot_dimension_numbers<[1], [0], [0], [1], [0, 0, 1, 1], [], []>} : vector<16x256xbf16>, vector<256x128xbf16>, vector<16x128xf32> -> vector<16x128xf32>
    %16 = vector.broadcast %13 : vector<1x128xf32> to vector<16x128xf32>
    %17 = arith.addf %15, %16 : vector<16x128xf32>
    %cst_12 = arith.constant 0.000000e+00 : f32
    %18 = vector.broadcast %cst_12 : f32 to vector<16x128xf32>
    %19 = arith.cmpf ogt, %17, %18 : vector<16x128xf32>
    %cst_13 = arith.constant 0.00999999977 : f32
    %20 = vector.broadcast %cst_13 : f32 to vector<16x128xf32>
    %21 = arith.mulf %20, %17 : vector<16x128xf32>
    %22 = arith.select %19, %17, %21 : vector<16x128xi1>, vector<16x128xf32>
    %c0_14 = arith.constant 0 : index
    %c0_15 = arith.constant 0 : index
    %23 = vector.load %arg6[%c0_14, %c0_15] : memref<128x128xbf16, #tpu.memory_space<vmem>>, vector<128x128xbf16>
    %c0_16 = arith.constant 0 : index
    %c0_17 = arith.constant 0 : index
    %24 = vector.load %arg7[%c0_16, %c0_17] : memref<1x128xf32, #tpu.memory_space<vmem>>, vector<1x128xf32>
    %25 = arith.truncf %22 : vector<16x128xf32> to vector<16x128xbf16>
    %cst_18 = arith.constant dense<0.000000e+00> : vector<16x128xf32>
    %26 = tpu.matmul %25, %23, %cst_18 {dimension_numbers = #tpu.dot_dimension_numbers<[1], [0], [0], [1], [0, 0, 1, 1], [], []>} : vector<16x128xbf16>, vector<128x128xbf16>, vector<16x128xf32> -> vector<16x128xf32>
    %27 = vector.broadcast %24 : vector<1x128xf32> to vector<16x128xf32>
    %28 = arith.addf %26, %27 : vector<16x128xf32>
    %cst_19 = arith.constant 0.000000e+00 : f32
    %29 = vector.broadcast %cst_19 : f32 to vector<16x128xf32>
    %30 = arith.cmpf ogt, %28, %29 : vector<16x128xf32>
    %cst_20 = arith.constant 0.00999999977 : f32
    %31 = vector.broadcast %cst_20 : f32 to vector<16x128xf32>
    %32 = arith.mulf %31, %28 : vector<16x128xf32>
    %33 = arith.select %30, %28, %32 : vector<16x128xi1>, vector<16x128xf32>
    %c0_21 = arith.constant 0 : index
    %c0_22 = arith.constant 0 : index
    %34 = vector.load %arg8[%c0_21, %c0_22] : memref<128x128xbf16, #tpu.memory_space<vmem>>, vector<128x128xbf16>
    %c0_23 = arith.constant 0 : index
    %c0_24 = arith.constant 0 : index
    %35 = vector.load %arg9[%c0_23, %c0_24] : memref<1x128xf32, #tpu.memory_space<vmem>>, vector<1x128xf32>
    %36 = arith.truncf %33 : vector<16x128xf32> to vector<16x128xbf16>
    %cst_25 = arith.constant dense<0.000000e+00> : vector<16x128xf32>
    %37 = tpu.matmul %36, %34, %cst_25 {dimension_numbers = #tpu.dot_dimension_numbers<[1], [0], [0], [1], [0, 0, 1, 1], [], []>} : vector<16x128xbf16>, vector<128x128xbf16>, vector<16x128xf32> -> vector<16x128xf32>
    %38 = vector.broadcast %35 : vector<1x128xf32> to vector<16x128xf32>
    %39 = arith.addf %37, %38 : vector<16x128xf32>
    %c0_26 = arith.constant 0 : index
    %c0_27 = arith.constant 0 : index
    %40 = vector.load %arg10[%c0_26, %c0_27] : memref<128x128xbf16, #tpu.memory_space<vmem>>, vector<128x128xbf16>
    %c0_28 = arith.constant 0 : index
    %c0_29 = arith.constant 0 : index
    %41 = vector.load %arg11[%c0_28, %c0_29] : memref<1x128xf32, #tpu.memory_space<vmem>>, vector<1x128xf32>
    %42 = arith.truncf %39 : vector<16x128xf32> to vector<16x128xbf16>
    %cst_30 = arith.constant dense<0.000000e+00> : vector<16x128xf32>
    %43 = tpu.matmul %42, %40, %cst_30 {dimension_numbers = #tpu.dot_dimension_numbers<[1], [0], [0], [1], [0, 0, 1, 1], [], []>} : vector<16x128xbf16>, vector<128x128xbf16>, vector<16x128xf32> -> vector<16x128xf32>
    %44 = vector.broadcast %41 : vector<1x128xf32> to vector<16x128xf32>
    %45 = arith.addf %43, %44 : vector<16x128xf32>
    %cst_31 = arith.constant 0.000000e+00 : f32
    %46 = vector.broadcast %cst_31 : f32 to vector<16x128xf32>
    %47 = arith.cmpf ogt, %45, %46 : vector<16x128xf32>
    %cst_32 = arith.constant 0.00999999977 : f32
    %48 = vector.broadcast %cst_32 : f32 to vector<16x128xf32>
    %49 = arith.mulf %48, %45 : vector<16x128xf32>
    %50 = arith.select %47, %45, %49 : vector<16x128xi1>, vector<16x128xf32>
    %c0_33 = arith.constant 0 : index
    %c0_34 = arith.constant 0 : index
    %51 = vector.load %arg12[%c0_33, %c0_34] : memref<128x128xbf16, #tpu.memory_space<vmem>>, vector<128x128xbf16>
    %c0_35 = arith.constant 0 : index
    %c0_36 = arith.constant 0 : index
    %52 = vector.load %arg13[%c0_35, %c0_36] : memref<1x128xf32, #tpu.memory_space<vmem>>, vector<1x128xf32>
    %53 = arith.truncf %50 : vector<16x128xf32> to vector<16x128xbf16>
    %cst_37 = arith.constant dense<0.000000e+00> : vector<16x128xf32>
    %54 = tpu.matmul %53, %51, %cst_37 {dimension_numbers = #tpu.dot_dimension_numbers<[1], [0], [0], [1], [0, 0, 1, 1], [], []>} : vector<16x128xbf16>, vector<128x128xbf16>, vector<16x128xf32> -> vector<16x128xf32>
    %55 = vector.broadcast %52 : vector<1x128xf32> to vector<16x128xf32>
    %56 = arith.addf %54, %55 : vector<16x128xf32>
    %cst_38 = arith.constant 0.000000e+00 : f32
    %57 = vector.broadcast %cst_38 : f32 to vector<16x128xf32>
    %58 = arith.cmpf ogt, %56, %57 : vector<16x128xf32>
    %cst_39 = arith.constant 0.00999999977 : f32
    %59 = vector.broadcast %cst_39 : f32 to vector<16x128xf32>
    %60 = arith.mulf %59, %56 : vector<16x128xf32>
    %61 = arith.select %58, %56, %60 : vector<16x128xi1>, vector<16x128xf32>
    %c0_40 = arith.constant 0 : index
    %c0_41 = arith.constant 0 : index
    %62 = vector.load %arg14[%c0_40, %c0_41] : memref<128x256xbf16, #tpu.memory_space<vmem>>, vector<128x256xbf16>
    %c0_42 = arith.constant 0 : index
    %c0_43 = arith.constant 0 : index
    %63 = vector.load %arg15[%c0_42, %c0_43] : memref<1x256xf32, #tpu.memory_space<vmem>>, vector<1x256xf32>
    %64 = arith.truncf %61 : vector<16x128xf32> to vector<16x128xbf16>
    %cst_44 = arith.constant dense<0.000000e+00> : vector<16x256xf32>
    %65 = tpu.matmul %64, %62, %cst_44 {dimension_numbers = #tpu.dot_dimension_numbers<[1], [0], [0], [1], [0, 0, 1, 1], [], []>} : vector<16x128xbf16>, vector<128x256xbf16>, vector<16x256xf32> -> vector<16x256xf32>
    %66 = vector.broadcast %63 : vector<1x256xf32> to vector<16x256xf32>
    %67 = arith.addf %65, %66 : vector<16x256xf32>
    %cst_45 = arith.constant 0.000000e+00 : f32
    %68 = vector.broadcast %cst_45 : f32 to vector<16x256xf32>
    %69 = arith.cmpf ogt, %67, %68 : vector<16x256xf32>
    %cst_46 = arith.constant 0.00999999977 : f32
    %70 = vector.broadcast %cst_46 : f32 to vector<16x256xf32>
    %71 = arith.mulf %70, %67 : vector<16x256xf32>
    %72 = arith.select %69, %67, %71 : vector<16x256xi1>, vector<16x256xf32>
    %c0_47 = arith.constant 0 : index
    %c0_48 = arith.constant 0 : index
    %73 = vector.load %arg16[%c0_47, %c0_48] : memref<256x128xbf16, #tpu.memory_space<vmem>>, vector<256x128xbf16>
    %c0_49 = arith.constant 0 : index
    %c0_50 = arith.constant 0 : index
    %74 = vector.load %arg17[%c0_49, %c0_50] : memref<1x128xf32, #tpu.memory_space<vmem>>, vector<1x128xf32>
    %75 = arith.truncf %72 : vector<16x256xf32> to vector<16x256xbf16>
    %cst_51 = arith.constant dense<0.000000e+00> : vector<16x128xf32>
    %76 = tpu.matmul %75, %73, %cst_51 {dimension_numbers = #tpu.dot_dimension_numbers<[1], [0], [0], [1], [0, 0, 1, 1], [], []>} : vector<16x256xbf16>, vector<256x128xbf16>, vector<16x128xf32> -> vector<16x128xf32>
    %77 = vector.broadcast %74 : vector<1x128xf32> to vector<16x128xf32>
    %78 = arith.addf %76, %77 : vector<16x128xf32>
    %c0_52 = arith.constant 0 : index
    %c0_53 = arith.constant 0 : index
    %79 = vector.load %arg18[%c0_52, %c0_53] : memref<16x128xf32, #tpu.memory_space<vmem>>, vector<16x128xf32>
    tpu.vector_store %arg18[%c0_52, %c0_53], %78 {strides = array<i32>} : memref<16x128xf32, #tpu.memory_space<vmem>>, vector<16x128xf32>,
    return
  }
  func.func @transform_0(%arg0: i32) -> (i32, i32) {
    %c0_i32 = arith.constant 0 : i32
    %c0_i32_0 = arith.constant 0 : i32
    return %arg0, %c0_i32 : i32, i32
  }
  func.func @transform_1(%arg0: i32) -> (i32, i32) {
    %c0_i32 = arith.constant 0 : i32
    %c0_i32_0 = arith.constant 0 : i32
    %c0_i32_1 = arith.constant 0 : i32
    return %c0_i32, %c0_i32_0 : i32, i32
  }
  func.func @transform_2(%arg0: i32) -> (i32, i32) {
    %c0_i32 = arith.constant 0 : i32
    %c0_i32_0 = arith.constant 0 : i32
    %c0_i32_1 = arith.constant 0 : i32
    return %c0_i32, %c0_i32_0 : i32, i32
  }
  func.func @transform_3(%arg0: i32) -> (i32, i32) {
    %c0_i32 = arith.constant 0 : i32
    %c0_i32_0 = arith.constant 0 : i32
    %c0_i32_1 = arith.constant 0 : i32
    return %c0_i32, %c0_i32_0 : i32, i32
  }
  func.func @transform_4(%arg0: i32) -> (i32, i32) {
    %c0_i32 = arith.constant 0 : i32
    %c0_i32_0 = arith.constant 0 : i32
    %c0_i32_1 = arith.constant 0 : i32
    return %c0_i32, %c0_i32_0 : i32, i32
  }
  func.func @transform_5(%arg0: i32) -> (i32, i32) {
    %c0_i32 = arith.constant 0 : i32
    %c0_i32_0 = arith.constant 0 : i32
    %c0_i32_1 = arith.constant 0 : i32
    return %c0_i32, %c0_i32_0 : i32, i32
  }
  func.func @transform_6(%arg0: i32) -> (i32, i32) {
    %c0_i32 = arith.constant 0 : i32
    %c0_i32_0 = arith.constant 0 : i32
    %c0_i32_1 = arith.constant 0 : i32
    return %c0_i32, %c0_i32_0 : i32, i32
  }
  func.func @transform_7(%arg0: i32) -> (i32, i32) {
    %c0_i32 = arith.constant 0 : i32
    %c0_i32_0 = arith.constant 0 : i32
    %c0_i32_1 = arith.constant 0 : i32
    return %c0_i32, %c0_i32_0 : i32, i32
  }
  func.func @transform_8(%arg0: i32) -> (i32, i32) {
    %c0_i32 = arith.constant 0 : i32
    %c0_i32_0 = arith.constant 0 : i32
    %c0_i32_1 = arith.constant 0 : i32
    return %c0_i32, %c0_i32_0 : i32, i32
  }
  func.func @transform_9(%arg0: i32) -> (i32, i32) {
    %c0_i32 = arith.constant 0 : i32
    %c0_i32_0 = arith.constant 0 : i32
    %c0_i32_1 = arith.constant 0 : i32
    return %c0_i32, %c0_i32_0 : i32, i32
  }
  func.func @transform_10(%arg0: i32) -> (i32, i32) {
    %c0_i32 = arith.constant 0 : i32
    %c0_i32_0 = arith.constant 0 : i32
    %c0_i32_1 = arith.constant 0 : i32
    return %c0_i32, %c0_i32_0 : i32, i32
  }
  func.func @transform_11(%arg0: i32) -> (i32, i32) {
    %c0_i32 = arith.constant 0 : i32
    %c0_i32_0 = arith.constant 0 : i32
    %c0_i32_1 = arith.constant 0 : i32
    return %c0_i32, %c0_i32_0 : i32, i32
  }
  func.func @transform_12(%arg0: i32) -> (i32, i32) {
    %c0_i32 = arith.constant 0 : i32
    %c0_i32_0 = arith.constant 0 : i32
    %c0_i32_1 = arith.constant 0 : i32
    return %c0_i32, %c0_i32_0 : i32, i32
  }
  func.func @transform_13(%arg0: i32) -> (i32, i32) {
    %c0_i32 = arith.constant 0 : i32
    %c0_i32_0 = arith.constant 0 : i32
    %c0_i32_1 = arith.constant 0 : i32
    return %c0_i32, %c0_i32_0 : i32, i32
  }
  func.func @transform_14(%arg0: i32) -> (i32, i32) {
    %c0_i32 = arith.constant 0 : i32
    %c0_i32_0 = arith.constant 0 : i32
    %c0_i32_1 = arith.constant 0 : i32
    return %c0_i32, %c0_i32_0 : i32, i32
  }
  func.func @transform_15(%arg0: i32) -> (i32, i32) {
    %c0_i32 = arith.constant 0 : i32
    %c0_i32_0 = arith.constant 0 : i32
    %c0_i32_1 = arith.constant 0 : i32
    return %c0_i32, %c0_i32_0 : i32, i32
  }
  func.func @transform_16(%arg0: i32) -> (i32, i32) {
    %c0_i32 = arith.constant 0 : i32
    %c0_i32_0 = arith.constant 0 : i32
    %c0_i32_1 = arith.constant 0 : i32
    return %c0_i32, %c0_i32_0 : i32, i32
  }
  func.func @transform_17(%arg0: i32) -> (i32, i32) {
    %c0_i32 = arith.constant 0 : i32
    %c0_i32_0 = arith.constant 0 : i32
    return %arg0, %c0_i32 : i32, i32
  }
}

module attributes {stable_mosaic.version = 11 : i64} {
  func.func @ae_kernel(%arg0: i32, %arg1: memref<16x128xf32, #tpu.memory_space<vmem>>, %arg2: memref<128x256xbf16, #tpu.memory_space<vmem>>, %arg3: memref<1x256xf32, #tpu.memory_space<vmem>>, %arg4: memref<256x128xbf16, #tpu.memory_space<vmem>>, %arg5: memref<1x128xf32, #tpu.memory_space<vmem>>, %arg6: memref<128x128xbf16, #tpu.memory_space<vmem>>, %arg7: memref<1x128xf32, #tpu.memory_space<vmem>>, %arg8: memref<128x128xbf16, #tpu.memory_space<vmem>>, %arg9: memref<1x128xf32, #tpu.memory_space<vmem>>, %arg10: memref<128x128xbf16, #tpu.memory_space<vmem>>, %arg11: memref<1x128xf32, #tpu.memory_space<vmem>>, %arg12: memref<128x128xbf16, #tpu.memory_space<vmem>>, %arg13: memref<1x128xf32, #tpu.memory_space<vmem>>, %arg14: memref<128x256xbf16, #tpu.memory_space<vmem>>, %arg15: memref<1x256xf32, #tpu.memory_space<vmem>>, %arg16: memref<256x128xbf16, #tpu.memory_space<vmem>>, %arg17: memref<1x128xf32, #tpu.memory_space<vmem>>, %arg18: memref<16x128xf32, #tpu.memory_space<vmem>>) attributes {dimension_semantics = [#tpu.dimension_semantics<parallel>], iteration_bounds = array<i64: 1>, scalar_prefetch = 0 : i64, scratch_operands = 0 : i64, tpu.core_type = #tpu.core_type<tc>, window_params = [{transform_indices = @transform_0, window_bounds = array<i64: 16, 128>}, {pipeline_mode = #tpu.pipeline_mode<synchronous>, transform_indices = @transform_1, window_bounds = array<i64: 128, 256>}, {pipeline_mode = #tpu.pipeline_mode<synchronous>, transform_indices = @transform_2, window_bounds = array<i64: 1, 256>}, {pipeline_mode = #tpu.pipeline_mode<synchronous>, transform_indices = @transform_3, window_bounds = array<i64: 256, 128>}, {pipeline_mode = #tpu.pipeline_mode<synchronous>, transform_indices = @transform_4, window_bounds = array<i64: 1, 128>}, {pipeline_mode = #tpu.pipeline_mode<synchronous>, transform_indices = @transform_5, window_bounds = array<i64: 128, 128>}, {pipeline_mode = #tpu.pipeline_mode<synchronous>, transform_indices = @transform_6, window_bounds = array<i64: 1, 128>}, {pipeline_mode = #tpu.pipeline_mode<synchronous>, transform_indices = @transform_7, window_bounds = array<i64: 128, 128>}, {pipeline_mode = #tpu.pipeline_mode<synchronous>, transform_indices = @transform_8, window_bounds = array<i64: 1, 128>}, {pipeline_mode = #tpu.pipeline_mode<synchronous>, transform_indices = @transform_9, window_bounds = array<i64: 128, 128>}, {pipeline_mode = #tpu.pipeline_mode<synchronous>, transform_indices = @transform_10, window_bounds = array<i64: 1, 128>}, {pipeline_mode = #tpu.pipeline_mode<synchronous>, transform_indices = @transform_11, window_bounds = array<i64: 128, 128>}, {pipeline_mode = #tpu.pipeline_mode<synchronous>, transform_indices = @transform_12, window_bounds = array<i64: 1, 128>}, {pipeline_mode = #tpu.pipeline_mode<synchronous>, transform_indices = @transform_13, window_bounds = array<i64: 128, 256>}, {pipeline_mode = #tpu.pipeline_mode<synchronous>, transform_indices = @transform_14, window_bounds = array<i64: 1, 256>}, {pipeline_mode = #tpu.pipeline_mode<synchronous>, transform_indices = @transform_15, window_bounds = array<i64: 256, 128>}, {pipeline_mode = #tpu.pipeline_mode<synchronous>, transform_indices = @transform_16, window_bounds = array<i64: 1, 128>}, {transform_indices = @transform_17, window_bounds = array<i64: 16, 128>}]} {
    %c0 = arith.constant 0 : index
    %c0_0 = arith.constant 0 : index
    %0 = vector.load %arg1[%c0, %c0_0] : memref<16x128xf32, #tpu.memory_space<vmem>>, vector<16x128xf32>
    %c0_1 = arith.constant 0 : index
    %c0_2 = arith.constant 0 : index
    %1 = vector.load %arg2[%c0_1, %c0_2] : memref<128x256xbf16, #tpu.memory_space<vmem>>, vector<128x256xbf16>
    %c0_3 = arith.constant 0 : index
    %c0_4 = arith.constant 0 : index
    %2 = vector.load %arg3[%c0_3, %c0_4] : memref<1x256xf32, #tpu.memory_space<vmem>>, vector<1x256xf32>
    %3 = arith.truncf %0 : vector<16x128xf32> to vector<16x128xbf16>
    %cst = arith.constant dense<0.000000e+00> : vector<16x256xf32>
    %4 = tpu.matmul %3, %1, %cst {dimension_numbers = #tpu.dot_dimension_numbers<[1], [0], [0], [1], [0, 0, 1, 1], [], []>} : vector<16x128xbf16>, vector<128x256xbf16>, vector<16x256xf32> -> vector<16x256xf32>
    %5 = vector.broadcast %2 : vector<1x256xf32> to vector<16x256xf32>
    %6 = arith.addf %4, %5 : vector<16x256xf32>
    %cst_5 = arith.constant 0.000000e+00 : f32
    %7 = vector.broadcast %cst_5 : f32 to vector<16x256xf32>
    %8 = arith.cmpf ogt, %6, %7 : vector<16x256xf32>
    %cst_6 = arith.constant 0.00999999977 : f32
    %9 = vector.broadcast %cst_6 : f32 to vector<16x256xf32>
    %10 = arith.mulf %9, %6 : vector<16x256xf32>
    %11 = arith.select %8, %6, %10 : vector<16x256xi1>, vector<16x256xf32>
    %c0_7 = arith.constant 0 : index
    %c0_8 = arith.constant 0 : index
    %12 = vector.load %arg4[%c0_7, %c0_8] : memref<256x128xbf16, #tpu.memory_space<vmem>>, vector<256x128xbf16>
    %c0_9 = arith.constant 0 : index
    %c0_10 = arith.constant 0 : index
    %13 = vector.load %arg5[%c0_9, %c0_10] : memref<1x128xf32, #tpu.memory_space<vmem>>, vector<1x128xf32>
    %14 = arith.truncf %11 : vector<16x256xf32> to vector<16x256xbf16>
    %cst_11 = arith.constant dense<0.000000e+00> : vector<16x128xf32>
    %15 = tpu.matmul %14, %12, %cst_11 {dimension_numbers = #tpu.dot_dimension_numbers<[1], [0], [0], [1], [0, 0, 1, 1], [], []>} : vector<16x256xbf16>, vector<256x128xbf16>, vector<16x128xf32> -> vector<16x128xf32>
    %16 = vector.broadcast %13 : vector<1x128xf32> to vector<16x128xf32>
    %17 = arith.addf %15, %16 : vector<16x128xf32>
    %cst_12 = arith.constant 0.000000e+00 : f32
    %18 = vector.broadcast %cst_12 : f32 to vector<16x128xf32>
    %19 = arith.cmpf ogt, %17, %18 : vector<16x128xf32>
    %cst_13 = arith.constant 0.00999999977 : f32
    %20 = vector.broadcast %cst_13 : f32 to vector<16x128xf32>
    %21 = arith.mulf %20, %17 : vector<16x128xf32>
    %22 = arith.select %19, %17, %21 : vector<16x128xi1>, vector<16x128xf32>
    %c0_14 = arith.constant 0 : index
    %c0_15 = arith.constant 0 : index
    %23 = vector.load %arg6[%c0_14, %c0_15] : memref<128x128xbf16, #tpu.memory_space<vmem>>, vector<128x128xbf16>
    %c0_16 = arith.constant 0 : index
    %c0_17 = arith.constant 0 : index
    %24 = vector.load %arg7[%c0_16, %c0_17] : memref<1x128xf32, #tpu.memory_space<vmem>>, vector<1x128xf32>
    %25 = arith.truncf %22 : vector<16x128xf32> to vector<16x128xbf16>
    %cst_18 = arith.constant dense<0.000000e+00> : vector<16x128xf32>
    %26 = tpu.matmul %25, %23, %cst_18 {dimension_numbers = #tpu.dot_dimension_numbers<[1], [0], [0], [1], [0, 0, 1, 1], [], []>} : vector<16x128xbf16>, vector<128x128xbf16>, vector<16x128xf32> -> vector<16x128xf32>
    %27 = vector.broadcast %24 : vector<1x128xf32> to vector<16x128xf32>
    %28 = arith.addf %26, %27 : vector<16x128xf32>
    %cst_19 = arith.constant 0.000000e+00 : f32
    %29 = vector.broadcast %cst_19 : f32 to vector<16x128xf32>
    %30 = arith.cmpf ogt, %28, %29 : vector<16x128xf32>
    %cst_20 = arith.constant 0.00999999977 : f32
    %31 = vector.broadcast %cst_20 : f32 to vector<16x128xf32>
    %32 = arith.mulf %31, %28 : vector<16x128xf32>
    %33 = arith.select %30, %28, %32 : vector<16x128xi1>, vector<16x128xf32>
    %c0_21 = arith.constant 0 : index
    %c0_22 = arith.constant 0 : index
    %34 = vector.load %arg8[%c0_21, %c0_22] : memref<128x128xbf16, #tpu.memory_space<vmem>>, vector<128x128xbf16>
    %c0_23 = arith.constant 0 : index
    %c0_24 = arith.constant 0 : index
    %35 = vector.load %arg9[%c0_23, %c0_24] : memref<1x128xf32, #tpu.memory_space<vmem>>, vector<1x128xf32>
    %36 = arith.truncf %33 : vector<16x128xf32> to vector<16x128xbf16>
    %cst_25 = arith.constant dense<0.000000e+00> : vector<16x128xf32>
    %37 = tpu.matmul %36, %34, %cst_25 {dimension_numbers = #tpu.dot_dimension_numbers<[1], [0], [0], [1], [0, 0, 1, 1], [], []>} : vector<16x128xbf16>, vector<128x128xbf16>, vector<16x128xf32> -> vector<16x128xf32>
    %38 = vector.broadcast %35 : vector<1x128xf32> to vector<16x128xf32>
    %39 = arith.addf %37, %38 : vector<16x128xf32>
    %c0_26 = arith.constant 0 : index
    %c0_27 = arith.constant 0 : index
    %40 = vector.load %arg10[%c0_26, %c0_27] : memref<128x128xbf16, #tpu.memory_space<vmem>>, vector<128x128xbf16>
    %c0_28 = arith.constant 0 : index
    %c0_29 = arith.constant 0 : index
    %41 = vector.load %arg11[%c0_28, %c0_29] : memref<1x128xf32, #tpu.memory_space<vmem>>, vector<1x128xf32>
    %42 = arith.truncf %39 : vector<16x128xf32> to vector<16x128xbf16>
    %cst_30 = arith.constant dense<0.000000e+00> : vector<16x128xf32>
    %43 = tpu.matmul %42, %40, %cst_30 {dimension_numbers = #tpu.dot_dimension_numbers<[1], [0], [0], [1], [0, 0, 1, 1], [], []>} : vector<16x128xbf16>, vector<128x128xbf16>, vector<16x128xf32> -> vector<16x128xf32>
    %44 = vector.broadcast %41 : vector<1x128xf32> to vector<16x128xf32>
    %45 = arith.addf %43, %44 : vector<16x128xf32>
    %cst_31 = arith.constant 0.000000e+00 : f32
    %46 = vector.broadcast %cst_31 : f32 to vector<16x128xf32>
    %47 = arith.cmpf ogt, %45, %46 : vector<16x128xf32>
    %cst_32 = arith.constant 0.00999999977 : f32
    %48 = vector.broadcast %cst_32 : f32 to vector<16x128xf32>
    %49 = arith.mulf %48, %45 : vector<16x128xf32>
    %50 = arith.select %47, %45, %49 : vector<16x128xi1>, vector<16x128xf32>
    %c0_33 = arith.constant 0 : index
    %c0_34 = arith.constant 0 : index
    %51 = vector.load %arg12[%c0_33, %c0_34] : memref<128x128xbf16, #tpu.memory_space<vmem>>, vector<128x128xbf16>
    %c0_35 = arith.constant 0 : index
    %c0_36 = arith.constant 0 : index
    %52 = vector.load %arg13[%c0_35, %c0_36] : memref<1x128xf32, #tpu.memory_space<vmem>>, vector<1x128xf32>
    %53 = arith.truncf %50 : vector<16x128xf32> to vector<16x128xbf16>
    %cst_37 = arith.constant dense<0.000000e+00> : vector<16x128xf32>
    %54 = tpu.matmul %53, %51, %cst_37 {dimension_numbers = #tpu.dot_dimension_numbers<[1], [0], [0], [1], [0, 0, 1, 1], [], []>} : vector<16x128xbf16>, vector<128x128xbf16>, vector<16x128xf32> -> vector<16x128xf32>
    %55 = vector.broadcast %52 : vector<1x128xf32> to vector<16x128xf32>
    %56 = arith.addf %54, %55 : vector<16x128xf32>
    %cst_38 = arith.constant 0.000000e+00 : f32
    %57 = vector.broadcast %cst_38 : f32 to vector<16x128xf32>
    %58 = arith.cmpf ogt, %56, %57 : vector<16x128xf32>
    %cst_39 = arith.constant 0.00999999977 : f32
    %59 = vector.broadcast %cst_39 : f32 to vector<16x128xf32>
    %60 = arith.mulf %59, %56 : vector<16x128xf32>
    %61 = arith.select %58, %56, %60 : vector<16x128xi1>, vector<16x128xf32>
    %c0_40 = arith.constant 0 : index
    %c0_41 = arith.constant 0 : index
    %62 = vector.load %arg14[%c0_40, %c0_41] : memref<128x256xbf16, #tpu.memory_space<vmem>>, vector<128x256xbf16>
    %c0_42 = arith.constant 0 : index
    %c0_43 = arith.constant 0 : index
    %63 = vector.load %arg15[%c0_42, %c0_43] : memref<1x256xf32, #tpu.memory_space<vmem>>, vector<1x256xf32>
    %64 = arith.truncf %61 : vector<16x128xf32> to vector<16x128xbf16>
    %cst_44 = arith.constant dense<0.000000e+00> : vector<16x256xf32>
    %65 = tpu.matmul %64, %62, %cst_44 {dimension_numbers = #tpu.dot_dimension_numbers<[1], [0], [0], [1], [0, 0, 1, 1], [], []>} : vector<16x128xbf16>, vector<128x256xbf16>, vector<16x256xf32> -> vector<16x256xf32>
    %66 = vector.broadcast %63 : vector<1x256xf32> to vector<16x256xf32>
    %67 = arith.addf %65, %66 : vector<16x256xf32>
    %cst_45 = arith.constant 0.000000e+00 : f32
    %68 = vector.broadcast %cst_45 : f32 to vector<16x256xf32>
    %69 = arith.cmpf ogt, %67, %68 : vector<16x256xf32>
    %cst_46 = arith.constant 0.00999999977 : f32
    %70 = vector.broadcast %cst_46 : f32 to vector<16x256xf32>
    %71 = arith.mulf %70, %67 : vector<16x256xf32>
    %72 = arith.select %69, %67, %71 : vector<16x256xi1>, vector<16x256xf32>
    %c0_47 = arith.constant 0 : index
    %c0_48 = arith.constant 0 : index
    %73 = vector.load %arg16[%c0_47, %c0_48] : memref<256x128xbf16, #tpu.memory_space<vmem>>, vector<256x128xbf16>
    %c0_49 = arith.constant 0 : index
    %c0_50 = arith.constant 0 : index
    %74 = vector.load %arg17[%c0_49, %c0_50] : memref<1x128xf32, #tpu.memory_space<vmem>>, vector<1x128xf32>
    %75 = arith.truncf %72 : vector<16x256xf32> to vector<16x256xbf16>
    %cst_51 = arith.constant dense<0.000000e+00> : vector<16x128xf32>
    %76 = tpu.matmul %75, %73, %cst_51 {dimension_numbers = #tpu.dot_dimension_numbers<[1], [0], [0], [1], [0, 0, 1, 1], [], []>} : vector<16x256xbf16>, vector<256x128xbf16>, vector<16x128xf32> -> vector<16x128xf32>
    %77 = vector.broadcast %74 : vector<1x128xf32> to vector<16x128xf32>
    %78 = arith.addf %76, %77 : vector<16x128xf32>
    %c0_52 = arith.constant 0 : index
    %c0_53 = arith.constant 0 : index
    %79 = vector.load %arg18[%c0_52, %c0_53] : memref<16x128xf32, #tpu.memory_space<vmem>>, vector<16x128xf32>
    tpu.vector_store %arg18[%c0_52, %c0_53], %78 {strides = array<i32>} : memref<16x128xf32, #tpu.memory_space<vmem>>, vector<16x128xf32>,
    return
  }
  func.func @transform_0(%arg0: i32) -> (i32, i32) {
    %c0_i32 = arith.constant 0 : i32
    %c0_i32_0 = arith.constant 0 : i32
    return %arg0, %c0_i32 : i32, i32
  }
  func.func @transform_1(%arg0: i32) -> (i32, i32) {
    %c0_i32 = arith.constant 0 : i32
    %c0_i32_0 = arith.constant 0 : i32
    %c0_i32_1 = arith.constant 0 : i32
    return %c0_i32, %c0_i32_0 : i32, i32
  }
  func.func @transform_2(%arg0: i32) -> (i32, i32) {
    %c0_i32 = arith.constant 0 : i32
    %c0_i32_0 = arith.constant 0 : i32
    %c0_i32_1 = arith.constant 0 : i32
    return %c0_i32, %c0_i32_0 : i32, i32
  }
  func.func @transform_3(%arg0: i32) -> (i32, i32) {
    %c0_i32 = arith.constant 0 : i32
    %c0_i32_0 = arith.constant 0 : i32
    %c0_i32_1 = arith.constant 0 : i32
    return %c0_i32, %c0_i32_0 : i32, i32
  }
  func.func @transform_4(%arg0: i32) -> (i32, i32) {
    %c0_i32 = arith.constant 0 : i32
    %c0_i32_0 = arith.constant 0 : i32
    %c0_i32_1 = arith.constant 0 : i32
    return %c0_i32, %c0_i32_0 : i32, i32
  }
  func.func @transform_5(%arg0: i32) -> (i32, i32) {
    %c0_i32 = arith.constant 0 : i32
    %c0_i32_0 = arith.constant 0 : i32
    %c0_i32_1 = arith.constant 0 : i32
    return %c0_i32, %c0_i32_0 : i32, i32
  }
  func.func @transform_6(%arg0: i32) -> (i32, i32) {
    %c0_i32 = arith.constant 0 : i32
    %c0_i32_0 = arith.constant 0 : i32
    %c0_i32_1 = arith.constant 0 : i32
    return %c0_i32, %c0_i32_0 : i32, i32
  }
  func.func @transform_7(%arg0: i32) -> (i32, i32) {
    %c0_i32 = arith.constant 0 : i32
    %c0_i32_0 = arith.constant 0 : i32
    %c0_i32_1 = arith.constant 0 : i32
    return %c0_i32, %c0_i32_0 : i32, i32
  }
  func.func @transform_8(%arg0: i32) -> (i32, i32) {
    %c0_i32 = arith.constant 0 : i32
    %c0_i32_0 = arith.constant 0 : i32
    %c0_i32_1 = arith.constant 0 : i32
    return %c0_i32, %c0_i32_0 : i32, i32
  }
  func.func @transform_9(%arg0: i32) -> (i32, i32) {
    %c0_i32 = arith.constant 0 : i32
    %c0_i32_0 = arith.constant 0 : i32
    %c0_i32_1 = arith.constant 0 : i32
    return %c0_i32, %c0_i32_0 : i32, i32
  }
  func.func @transform_10(%arg0: i32) -> (i32, i32) {
    %c0_i32 = arith.constant 0 : i32
    %c0_i32_0 = arith.constant 0 : i32
    %c0_i32_1 = arith.constant 0 : i32
    return %c0_i32, %c0_i32_0 : i32, i32
  }
  func.func @transform_11(%arg0: i32) -> (i32, i32) {
    %c0_i32 = arith.constant 0 : i32
    %c0_i32_0 = arith.constant 0 : i32
    %c0_i32_1 = arith.constant 0 : i32
    return %c0_i32, %c0_i32_0 : i32, i32
  }
  func.func @transform_12(%arg0: i32) -> (i32, i32) {
    %c0_i32 = arith.constant 0 : i32
    %c0_i32_0 = arith.constant 0 : i32
    %c0_i32_1 = arith.constant 0 : i32
    return %c0_i32, %c0_i32_0 : i32, i32
  }
  func.func @transform_13(%arg0: i32) -> (i32, i32) {
    %c0_i32 = arith.constant 0 : i32
    %c0_i32_0 = arith.constant 0 : i32
    %c0_i32_1 = arith.constant 0 : i32
    return %c0_i32, %c0_i32_0 : i32, i32
  }
  func.func @transform_14(%arg0: i32) -> (i32, i32) {
    %c0_i32 = arith.constant 0 : i32
    %c0_i32_0 = arith.constant 0 : i32
    %c0_i32_1 = arith.constant 0 : i32
    return %c0_i32, %c0_i32_0 : i32, i32
  }
  func.func @transform_15(%arg0: i32) -> (i32, i32) {
    %c0_i32 = arith.constant 0 : i32
    %c0_i32_0 = arith.constant 0 : i32
    %c0_i32_1 = arith.constant 0 : i32
    return %c0_i32, %c0_i32_0 : i32, i32
  }
  func.func @transform_16(%arg0: i32) -> (i32, i32) {
    %c0_i32 = arith.constant 0 : i32
    %c0_i32_0 = arith.constant 0 : i32
    %c0_i32_1 = arith.constant 0 : i32
    return %c0_i32, %c0_i32_0 : i32, i32
  }
  func.func @transform_17(%arg0: i32) -> (i32, i32) {
    %c0_i32 = arith.constant 0 : i32
    %c0_i32_0 = arith.constant 0 : i32
    return %arg0, %c0_i32 : i32, i32
  }
}

</mosaic_0001>

<bundles_post_ra>
// kernel: tpu_custom_call.1
= control target key start
LH: loop header
LB: loop body
LE: loop exit
PB: predicated region body
PF: predicated region fallthrough
CT: control target
= control target key end

     0   :  { %s2213_s0 = inlined_call_operand.hbm [shape: f32[16,128], index: 0, kind: input, shape index: {}]   ;;  %s2214_s1 = inlined_call_operand.hbm [shape: bf16[128,256], index: 1, kind: input, shape index: {}]   ;;  %s2215_s2 = inlined_call_operand.vmem [shape: f32[1,256], index: 2, kind: input, shape index: {}]   ;;  %s2216_s3 = inlined_call_operand.hbm [shape: bf16[256,128], index: 3, kind: input, shape index: {}]   ;;  %s2217_s4 = inlined_call_operand.vmem [shape: f32[1,128], index: 4, kind: input, shape index: {}]   ;;  %s2218_s5 = inlined_call_operand.hbm [shape: bf16[128,128], index: 5, kind: input, shape index: {}]   ;;  %s2219_s6 = inlined_call_operand.vmem [shape: f32[1,128], index: 6, kind: input, shape index: {}]   ;;  %s2220_s7 = inlined_call_operand.hbm [shape: bf16[128,128], index: 7, kind: input, shape index: {}]   ;;  %s2221_s8 = inlined_call_operand.vmem [shape: f32[1,128], index: 8, kind: input, shape index: {}]   ;;  %s2222_s9 = inlined_call_operand.hbm [shape: bf16[128,128], index: 9, kind: input, shape index: {}]   ;;  %s2223_s10 = inlined_call_operand.vmem [shape: f32[1,128], index: 10, kind: input, shape index: {}]   ;;  %s2224_s11 = inlined_call_operand.hbm [shape: bf16[128,128], index: 11, kind: input, shape index: {}]   ;;  %s2225_s12 = inlined_call_operand.vmem [shape: f32[1,128], index: 12, kind: input, shape index: {}]   ;;  %s2226_s13 = inlined_call_operand.hbm [shape: bf16[128,256], index: 13, kind: input, shape index: {}]   ;;  %s2227_s14 = inlined_call_operand.vmem [shape: f32[1,256], index: 14, kind: input, shape index: {}]   ;;  %s2228_s15 = inlined_call_operand.hbm [shape: bf16[256,128], index: 15, kind: input, shape index: {}]   ;;  %s2229_s16 = inlined_call_operand.vmem [shape: f32[1,128], index: 16, kind: input, shape index: {}]   ;;  %s2230_s17 = inlined_call_operand.hbm [shape: f32[16,128], index: 17, kind: output, shape index: {}]  }
   0x1   :  { %2231 = sst [smem:[#allocation24_spill]] %s2213_s0 }
   0x2   :  { %2232 = sst [smem:[#allocation25_spill]] %s2214_s1 }
   0x3   :  { %22 = vsyncpa [#allocation3], 0 }
   0x4   :  { %23 = vsyncpa [#allocation6], 0 }
   0x5   :  { %24 = vsyncpa [#allocation9], 0 }
   0x6   :  { %25 = vsyncpa [#allocation12], 0 }
   0x7   :  { %26 = vsyncpa [#allocation15], 0 }
   0x8   :  { %27 = vsyncpa [#allocation4], 0  ;;  %s1968_s24 = smov [#allocation5]  }
   0x9   :  { %s45_s25 = sshll.u32 %s1968_s24, 4  ;;  %s46_s25 = int_to_ptr.vmem [resolvable:$true] %s45_s25 }
   0xa   :  { %s1764_s26 = scalar_lea.vmem %s46_s25, 2048  ;;  %p1769_p1 = scmp.lt.s32.totalorder %s46_s25, %s46_s25 }
   0xb   :  { %p1765_p0 = scmp.ne.s32.totalorder %s46_s25, %s1764_s26  ;;  %p1770_p2 = scmp.lt.s32.totalorder %s1764_s26, %s1764_s26 }
   0xd   :  { %p1771_p3 = por %p1770_p2, %p1769_p1 }
   0xf   :  { %p1772_p4 = pnand %p1771_p3, %p1765_p0 }
  0x11   :  { %1775 = shalt.err (!%p1772_p4)
}
  0x12   :  { %s1969_s27 = smov 128   ;;  %s1970_s28 = smov 8  }
  0x13   :  { %s2233_s30 = sld [smem:[#allocation25_spill]]  ;;  %s1971_s18 = smov [#allocation8]  }
  0x14   :  { %s73_s19 = sshll.u32 %s1971_s18, 4  ;;  %s1972_s1 = smov [#allocation11]   ;;  %s74_s19 = int_to_ptr.vmem [resolvable:$true] %s73_s19 }
  0x15   :  { %s101_s20 = sshll.u32 %s1972_s1, 4  ;;  %s1784_s21 = scalar_lea.vmem %s74_s19, 1024  ;;  %s102_s20 = int_to_ptr.vmem [resolvable:$true] %s101_s20 }
  0x16   :  { %p1785_p5 = scmp.ne.s32.totalorder %s74_s19, %s1784_s21  ;;  %p1789_p6 = scmp.lt.s32.totalorder %s74_s19, %s74_s19 }
  0x17   :  { %p1790_p7 = scmp.lt.s32.totalorder %s1784_s21, %s1784_s21 }
  0x19   :  { %51 = dma.hbm_to_vmem [thread:$0]  %s2233_s30, 2048, %s46_s25, [#allocation6], %s1969_s27, %s1969_s27, %s1970_s28  }
  0x1a   :  { %p1791_p8 = por %p1790_p7, %p1789_p6 }
  0x1c   :  { %p1792_p9 = pnand %p1791_p8, %p1785_p5 }
  0x1e   :  { %1795 = shalt.err (!%p1792_p9)
}
  0x1f   :  { %s1973_s22 = smov 64   ;;  %s1974_s23 = smov 4  }
  0x20   :  { %79 = dma.hbm_to_vmem [thread:$0]  %s2218_s5, 1024, %s74_s19, [#allocation9], %s1973_s22, %s1973_s22, %s1974_s23  }
  0x21   :  { %s1804_s25 = scalar_lea.vmem %s102_s20, 1024  ;;  %p1809_p11 = scmp.lt.s32.totalorder %s102_s20, %s102_s20 }
  0x22   :  { %p1805_p10 = scmp.ne.s32.totalorder %s102_s20, %s1804_s25  ;;  %p1810_p12 = scmp.lt.s32.totalorder %s1804_s25, %s1804_s25 }
  0x24   :  { %p1811_p13 = por %p1810_p12, %p1809_p11 }
  0x26   :  { %p1812_p0 = pnand %p1811_p13, %p1805_p10 }
  0x28   :  { %1815 = shalt.err (!%p1812_p0)
}
  0x29   :  { %107 = dma.hbm_to_vmem [thread:$0]  %s2222_s9, 1024, %s102_s20, [#allocation12], %s1973_s22, %s1973_s22, %s1974_s23  }
  0x2a   :  { %s1975_s30 = smov [#allocation14]   ;;  %s1976_s1 = smov [#allocation2]  }
  0x2b   :  { %s129_s18 = sshll.u32 %s1975_s30, 4  ;;  %s33_s5 = sshll.u32 %s1976_s1, 4  ;;  %s130_s18 = int_to_ptr.vmem [resolvable:$true] %s129_s18  ;;  %s34_s5 = int_to_ptr.vmem [resolvable:$true] %s33_s5 }
  0x2c   :  { %s1824_s19 = scalar_lea.vmem %s130_s18, 2048  ;;  %p1829_p2 = scmp.lt.s32.totalorder %s130_s18, %s130_s18 }
  0x2d   :  { %p1825_p1 = scmp.ne.s32.totalorder %s130_s18, %s1824_s19  ;;  %p1830_p3 = scmp.lt.s32.totalorder %s1824_s19, %s1824_s19 }
  0x2f   :  { %p1831_p4 = por %p1830_p3, %p1829_p2 }
  0x31   :  { %p1832_p5 = pnand %p1831_p4, %p1825_p1 }
  0x33   :  { %1835 = shalt.err (!%p1832_p5)
}
  0x34   :  { %135 = dma.hbm_to_vmem [thread:$0]  %s2226_s13, 2048, %s130_s18, [#allocation15], %s1969_s27, %s1969_s27, %s1970_s28  }
  0x35   :  { %s1844_s9 = scalar_lea.vmem %s34_s5, 256  ;;  %p1849_p7 = scmp.lt.s32.totalorder %s34_s5, %s34_s5 }
  0x36   :  { %p1845_p6 = scmp.ne.s32.totalorder %s34_s5, %s1844_s9  ;;  %p1850_p8 = scmp.lt.s32.totalorder %s1844_s9, %s1844_s9 }
  0x38   :  { %p1851_p9 = por %p1850_p8, %p1849_p7 }
  0x3a   :  { %p1852_p10 = pnand %p1851_p9, %p1845_p6 }
  0x3c   :  { %1855 = shalt.err (!%p1852_p10)
}
  0x3d   :  { %s2234_s25 = sld [smem:[#allocation24_spill]]  ;;  %s1977_s29 = smov [#allocation7]  }
  0x3e   :  { %s59_s0 = sshll.u32 %s1977_s29, 4  ;;  %s1978_s30 = smov [#allocation10]   ;;  %s60_s0 = int_to_ptr.vmem [resolvable:$true] %s59_s0 }
  0x3f   :  { %s87_s13 = sshll.u32 %s1978_s30, 4  ;;  %s1864_s18 = scalar_lea.vmem %s60_s0, 2048  ;;  %s88_s13 = int_to_ptr.vmem [resolvable:$true] %s87_s13 }
  0x40   :  { %p1865_p11 = scmp.ne.s32.totalorder %s60_s0, %s1864_s18  ;;  %p1869_p12 = scmp.lt.s32.totalorder %s60_s0, %s60_s0 }
  0x41   :  { %p1870_p13 = scmp.lt.s32.totalorder %s1864_s18, %s1864_s18 }
  0x43   :  { %39 = dma.hbm_to_vmem [thread:$0]  %s2234_s25, 256, %s34_s5, [#allocation3], %s1969_s27, %s1969_s27, %s1970_s28  }
  0x44   :  { %p1871_p0 = por %p1870_p13, %p1869_p12 }
  0x46   :  { %p1872_p1 = pnand %p1871_p0, %p1865_p11 }
  0x48   :  { %1875 = shalt.err (!%p1872_p1)
}
  0x49   :  { %65 = dma.hbm_to_vmem [thread:$0]  %s2216_s3, 2048, %s60_s0, [#allocation6], %s1973_s22, %s1973_s22, %s1974_s23  }
  0x4a   :  { %s1884_s5 = scalar_lea.vmem %s88_s13, 1024  ;;  %p1889_p3 = scmp.lt.s32.totalorder %s88_s13, %s88_s13 }
  0x4b   :  { %p1885_p2 = scmp.ne.s32.totalorder %s88_s13, %s1884_s5  ;;  %p1890_p4 = scmp.lt.s32.totalorder %s1884_s5, %s1884_s5 }
  0x4d   :  { %p1891_p5 = por %p1890_p4, %p1889_p3 }
  0x4f   :  { %p1892_p6 = pnand %p1891_p5, %p1885_p2 }
  0x51   :  { %1895 = shalt.err (!%p1892_p6)
}
  0x52   :  { %93 = dma.hbm_to_vmem [thread:$0]  %s2220_s7, 1024, %s88_s13, [#allocation9], %s1973_s22, %s1973_s22, %s1974_s23  }
  0x53   :  { %s1979_s9 = smov [#allocation13]   ;;  %s1980_s26 = smov [#allocation16]  }
  0x54   :  { %s115_s20 = sshll.u32 %s1979_s9, 4  ;;  %s143_s3 = sshll.u32 %s1980_s26, 4  ;;  %s116_s20 = int_to_ptr.vmem [resolvable:$true] %s115_s20  ;;  %s144_s3 = int_to_ptr.vmem [resolvable:$true] %s143_s3 }
  0x55   :  { %s1904_s25 = scalar_lea.vmem %s116_s20, 1024  ;;  %p1909_p8 = scmp.lt.s32.totalorder %s116_s20, %s116_s20 }
  0x56   :  { %p1905_p7 = scmp.ne.s32.totalorder %s116_s20, %s1904_s25  ;;  %p1910_p9 = scmp.lt.s32.totalorder %s1904_s25, %s1904_s25 }
  0x58   :  { %p1911_p10 = por %p1910_p9, %p1909_p8 }
  0x5a   :  { %p1912_p11 = pnand %p1911_p10, %p1905_p7 }
  0x5c   :  { %1915 = shalt.err (!%p1912_p11)
}
  0x5d   :  { %121 = dma.hbm_to_vmem [thread:$0]  %s2224_s11, 1024, %s116_s20, [#allocation12], %s1973_s22, %s1973_s22, %s1974_s23  }
  0x5e   :  { %s1924_s7 = scalar_lea.vmem %s144_s3, 2048  ;;  %p1929_p13 = scmp.lt.s32.totalorder %s144_s3, %s144_s3 }
  0x5f   :  { %p1925_p12 = scmp.ne.s32.totalorder %s144_s3, %s1924_s7  ;;  %p1930_p0 = scmp.lt.s32.totalorder %s1924_s7, %s1924_s7 }
  0x61   :  { %p1931_p1 = por %p1930_p0, %p1929_p13 }
  0x63   :  { %p1932_p2 = pnand %p1931_p1, %p1925_p12 }
  0x65   :  { %1935 = shalt.err (!%p1932_p2)
}
  0x66   :  { %149 = dma.hbm_to_vmem [thread:$0]  %s2228_s15, 2048, %s144_s3, [#allocation15], %s1973_s22, %s1973_s22, %s1974_s23  }
  0x67   :  { %1956 = dma.done.wait [#allocation3], 256  }
  0x68   :  { %1957 = vsyncadd [#allocation3], 4294967040 }
  0x69   :  { %1958 = dma.done.wait [#allocation6], 4096  }
  0x6a   :  { %1959 = vsyncadd [#allocation6], 4294963200 }
  0x6b   :  { %1960 = dma.done.wait [#allocation9], 2048  }
  0x6c   :  { %1961 = vsyncadd [#allocation9], 4294965248 }
  0x6d   :  { %1962 = dma.done.wait [#allocation12], 2048  }
  0x6e   :  { %1963 = vsyncadd [#allocation12], 4294965248 }
  0x6f   :  { %1964 = dma.done.wait [#allocation15], 4096  }
  0x70   :  { %1965 = vsyncadd [#allocation15], 4294963200  ;;  %v1981_v0 = vmov 0   ;;  %v1644_v1 = vld [vmem:[#allocation5 + $0x74] ss:$8 sps:$4 sm:$0xff]   ;;  %v1672_v16 = vld [vmem:[#allocation7 + $0x68] sm:$0xff]   ;;  %v201_v41 = vlaneseq }
  0x71   :  { %323 = vmatprep.mubr.bf16.mxu0 %v1981_v0  ;;  %v1646_v2 = vld [vmem:[#allocation5 + $0x70] ss:$8 sps:$4 sm:$0xff]   ;;  %291 = vmatprep.subr.bf16.mxu0 %v1644_v1  ;;  %v1647_v3 = vld [vmem:[#allocation5 + $0x64] ss:$8 sps:$4 sm:$0xff]   ;;  %v1649_v4 = vld [vmem:[#allocation5 + $0x60] ss:$8 sps:$4 sm:$0xff]  }
  0x72   :  { %292 = vmatpush1.bf16.msra.mxu0 %v1646_v2  ;;  %v1650_v5 = vld [vmem:[#allocation5 + $0x54] ss:$8 sps:$4 sm:$0xff]   ;;  %v1652_v6 = vld [vmem:[#allocation5 + $0x50] ss:$8 sps:$4 sm:$0xff]   ;;  %v1653_v7 = vld [vmem:[#allocation5 + $0x44] ss:$8 sps:$4 sm:$0xff]  }
  0x73   :  { %293 = vmatprep.subr.bf16.mxu0 %v1647_v3  ;;  %v1655_v8 = vld [vmem:[#allocation5 + $0x40] ss:$8 sps:$4 sm:$0xff]   ;;  %v1656_v9 = vld [vmem:[#allocation5 + $0x34] ss:$8 sps:$4 sm:$0xff]   ;;  %v1658_v11 = vld [vmem:[#allocation5 + $0x30] ss:$8 sps:$4 sm:$0xff]  }
  0x74   :  { %v1668_v10 = vld [vmem:[#allocation7 + $0x78] sm:$0xff]   ;;  %v1659_v13 = vld [vmem:[#allocation5 + $0x24] ss:$8 sps:$4 sm:$0xff]   ;;  %v1670_v14 = vld [vmem:[#allocation7 + $0x70] sm:$0xff]   ;;  %v1982_v37 = vmov 0.0   ;;  %v2136_v42 = vshrl.u32 %v201_v41, 7 }
  0x75   :  { %v1669_v12 = vld [vmem:[#allocation7 + $0x38] sm:$0xff]   ;;  %1467 = vmatprep.subr.bf16.mxu1 %v1668_v10  ;;  %v1671_v15 = vld [vmem:[#allocation7 + $0x30] sm:$0xff]   ;;  %v1661_v17 = vld [vmem:[#allocation5 + $0x20] ss:$8 sps:$4 sm:$0xff]   ;;  %vm1983_vm4 = vmmov 0   ;;  %s1984_s24 = smov [#allocation17]  }
  0x76   :  { %294 = vmatpush1.bf16.msra.mxu0 %v1649_v4  ;;  %1468 = vmatpush3.bf16.msra.mxu1 %v1669_v12  ;;  %v1673_v18 = vld [vmem:[#allocation7 + $0x28] sm:$0xff]   ;;  %v1662_v19 = vld [vmem:[#allocation5 + $0x14] ss:$8 sps:$4 sm:$0xff]   ;;  %v1674_v20 = vld [vmem:[#allocation7 + $0x60] sm:$0xff]   ;;  %v207_v43 = vsub.s32 1, %v2136_v42  ;;  %v203_v44 = vsub.s32 0, %v2136_v42 }
  0x77   :  { %295 = vmatprep.subr.bf16.mxu0 %v1650_v5  ;;  %1469 = vmatprep.subr.bf16.mxu1 %v1670_v14  ;;  %v1664_v21 = vld [vmem:[#allocation5 + $0x10] ss:$8 sps:$4 sm:$0xff]   ;;  %v1675_v22 = vld [vmem:[#allocation7 + $0x20] sm:$0xff]   ;;  %v1680_v32 = vld [vmem:[#allocation7 + $0x48] sm:$0xff]   ;;  %s1349_s9 = sshll.u32 %s1984_s24, 4  ;;  %s1350_s9 = int_to_ptr.vmem [resolvable:$true] %s1349_s9 }
  0x78   :  { %v1665_v23 = vld [vmem:[#allocation5 + $0x4] ss:$8 sps:$4 sm:$0xff]   ;;  %v1676_v24 = vld [vmem:[#allocation7 + $0x58] sm:$0xff]   ;;  %v1667_v25 = vld [vmem:[#allocation5] ss:$8 sps:$4 sm:$0xff]   ;;  %s1936_s20 = scalar_lea.vmem %s1350_s9, 256  ;;  %p1941_p4 = scmp.lt.s32.totalorder %s1350_s9, %s1350_s9 }
  0x79   :  { %v180_v26 = vld [vmem:[#allocation2] sm:$0xff]  ;;  %v181_v27 = vld [vmem:[#allocation2 + $0x8] sm:$0xff]  ;;  %v1681_v33 = vld [vmem:[#allocation7 + $0x8] sm:$0xff]   ;;  %p1937_p3 = scmp.ne.s32.totalorder %s1350_s9, %s1936_s20  ;;  %p1942_p5 = scmp.lt.s32.totalorder %s1936_s20, %s1936_s20 }
  0x7a   :  { %296 = vmatpush1.bf16.msra.mxu0 %v1652_v6  ;;  %1470 = vmatpush3.bf16.msra.mxu1 %v1671_v15  ;;  %v199_v28 = vpack.c.bf16 %v181_v27, %v180_v26  ;;  %v1677_v29 = vld [vmem:[#allocation7 + $0x18] sm:$0xff]   ;;  %v1678_v30 = vld [vmem:[#allocation7 + $0x50] sm:$0xff]   ;;  %v1682_v34 = vld [vmem:[#allocation7 + $0x40] sm:$0xff]  }
  0x7b   :  { %297 = vmatprep.subr.bf16.mxu0 %v1653_v7  ;;  %1471 = vmatprep.subr.bf16.mxu1 %v1672_v16  ;;  %v1679_v31 = vld [vmem:[#allocation7 + $0x10] sm:$0xff]   ;;  %v1683_v35 = vld [vmem:[#allocation7] sm:$0xff]   ;;  %v1684_v36 = vld [vmem:[#allocation8 + $0x38] sm:$0xff]   ;;  %p1943_p6 = por %p1942_p5, %p1941_p4 }
  0x7c   :  { %v1685_v38 = vld [vmem:[#allocation8 + $0x30] sm:$0xff]   ;;  %v1686_v39 = vld [vmem:[#allocation8 + $0x28] sm:$0xff]   ;;  %v1687_v40 = vld [vmem:[#allocation8 + $0x20] sm:$0xff]  }
  0x7d   :  { %v198_v45 = vld [vmem:[%s2215_s2] sm:$0x3]  ;;  %v1688_v3 = vld [vmem:[#allocation8 + $0x18] sm:$0xff]   ;;  %v1690_v5 = vld [vmem:[#allocation8 + $0x8] sm:$0xff]   ;;  %p1944_p7 = pnand %p1943_p6, %p1937_p3 }
  0x7e   :  { %298 = vmatpush1.bf16.msra.mxu0 %v1655_v8  ;;  %1472 = vmatpush3.bf16.msra.mxu1 %v1673_v18  ;;  %v208_v46 = vrot.slane %v198_v45, %v207_v43  ;;  %v204_v47 = vrot.slane %v198_v45, %v203_v44  ;;  %v1689_v4 = vld [vmem:[#allocation8 + $0x10] sm:$0xff]   ;;  %v1691_v6 = vld [vmem:[#allocation8] sm:$0xff]   ;;  %v1692_v7 = vld [vmem:[#allocation10 + $0x38] sm:$0xff]  }
  0x7f   :  { %299 = vmatprep.subr.bf16.mxu0 %v1656_v9  ;;  %1473 = vmatprep.subr.bf16.mxu1 %v1674_v20  ;;  %v1693_v8 = vld [vmem:[#allocation10 + $0x30] sm:$0xff]   ;;  %v1694_v9 = vld [vmem:[#allocation10 + $0x28] sm:$0xff]   ;;  %v1695_v10 = vld [vmem:[#allocation10 + $0x20] sm:$0xff]  }
  0x80   :  { %v1697_v26 = vld [vmem:[#allocation10 + $0x10] sm:$0xff]   ;;  %v1698_v27 = vld [vmem:[#allocation10 + $0x8] sm:$0xff]  }
  0x82   :  { %300 = vmatpush1.bf16.msra.mxu0 %v1658_v11  ;;  %1474 = vmatpush3.bf16.msra.mxu1 %v1675_v22  ;;  %v1696_v11 = vld [vmem:[#allocation10 + $0x18] sm:$0xff]  }
  0x83   :  { %301 = vmatprep.subr.bf16.mxu0 %v1659_v13  ;;  %1475 = vmatprep.subr.bf16.mxu1 %v1676_v24  ;;  %v1381_v13 = vld [vmem:[%s2217_s4] ss:$0 sm:$0xff] }
  0x86   :  { %302 = vmatpush1.bf16.msra.mxu0 %v1661_v17  ;;  %1476 = vmatpush3.bf16.msra.mxu1 %v1677_v29  ;;  %v1700_v29 = vld [vmem:[#allocation11 + $0x38] sm:$0xff]  }
  0x87   :  { %303 = vmatprep.subr.bf16.mxu0 %v1662_v19  ;;  %1477 = vmatprep.subr.bf16.mxu1 %v1678_v30  ;;  %v1701_v30 = vld [vmem:[#allocation11 + $0x30] sm:$0xff]  }
  0x8a   :  { %304 = vmatpush1.bf16.msra.mxu0 %v1664_v21  ;;  %1478 = vmatpush3.bf16.msra.mxu1 %v1679_v31  ;;  %v1702_v31 = vld [vmem:[#allocation11 + $0x28] sm:$0xff]  }
  0x8b   :  { %305 = vmatprep.subr.bf16.mxu0 %v1665_v23  ;;  %1479 = vmatprep.subr.bf16.mxu1 %v1680_v32  ;;  %v1703_v32 = vld [vmem:[#allocation11 + $0x20] sm:$0xff]  }
  0x8e   :  { %306 = vmatpush1.bf16.msra.mxu0 %v1667_v25  ;;  %1480 = vmatpush3.bf16.msra.mxu1 %v1681_v33  ;;  %v1704_v33 = vld [vmem:[#allocation11 + $0x18] sm:$0xff]  }
  0x8f   :  { %1481 = vmatprep.subr.bf16.mxu1 %v1682_v34  ;;  %1547 = vmatprep.subr.bf16.mxu0 %v1982_v37  ;;  %v1705_v34 = vld [vmem:[#allocation11 + $0x10] sm:$0xff]  }
  0x91   :  { %324 = vmatmul.mubr.bf16.vlgmr.msra.gmra.mxu0 %v199_v28  ;;  %v1699_v28 = vld [vmem:[#allocation10] sm:$0xff]  }
  0x92   :  { %1482 = vmatpush3.bf16.msra.mxu1 %v1683_v35  ;;  %1548 = vmatpush3.bf16.msra.mxu0 %v1684_v36  ;;  %v1398_v35 = vld [vmem:[%s2219_s6] ss:$0 sm:$0xff] }
  0x93   :  { %1567 = vmatprep.subr.bf16.mxu1 %v1982_v37  ;;  %1549 = vmatprep.subr.bf16.mxu0 %v1982_v37 }
  0x94   :  { %1563 = vmatprep.mubr.msk.bf16.mxu0 %vm1983_vm4, %v1982_v37 }
  0x96   :  { %1550 = vmatpush3.bf16.msra.mxu0 %v1685_v38 }
  0x97   :  { %1551 = vmatprep.subr.bf16.mxu0 %v1982_v37 }
  0x9a   :  { %1552 = vmatpush3.bf16.msra.mxu0 %v1686_v39 }
  0x9b   :  { %1553 = vmatprep.subr.bf16.mxu0 %v1982_v37 }
  0x9e   :  { %1554 = vmatpush3.bf16.msra.mxu0 %v1687_v40 }
  0x9f   :  { %1555 = vmatprep.subr.bf16.mxu0 %v1982_v37 }
  0xa2   :  { %1556 = vmatpush3.bf16.msra.mxu0 %v1688_v3  ;;  %v1713_v3 = vld [vmem:[#allocation13 + $0x10] sm:$0xff]  }
  0xa3   :  { %1557 = vmatprep.subr.bf16.mxu0 %v1982_v37 }
  0xa6   :  { %1558 = vmatpush3.bf16.msra.mxu0 %v1689_v4  ;;  %v1714_v4 = vld [vmem:[#allocation13 + $0x8] sm:$0xff]  }
  0xa7   :  { %1559 = vmatprep.subr.bf16.mxu0 %v1982_v37 }
  0xaa   :  { %1560 = vmatpush3.bf16.msra.mxu0 %v1690_v5  ;;  %v1715_v5 = vld [vmem:[#allocation13] sm:$0xff]  }
  0xab   :  { %1561 = vmatprep.subr.bf16.mxu0 %v1982_v37 }
  0xae   :  { %1562 = vmatpush3.bf16.msra.mxu0 %v1691_v6  ;;  %v1716_v6 = vld [vmem:[#allocation14 + $0x70] ss:$8 sps:$4 sm:$0xff]  }
  0xaf   :  { %1587 = vmatprep.subr.bf16.mxu0 %v1982_v37 }
 0x151   :  { %v325_v48 = vpop.f32.mrf.mxu0 }
 0x152   :  { %v326_v51 = vadd.f32 %v325_v48, %v204_v47 }
 0x153   :  { %v327_v49 = vpop.f32.mrf.mxu0 }
 0x154   :  { %v328_v50 = vadd.f32 %v327_v49, %v208_v46  ;;  %v338_v58 = vmul.f32 0.01, %v326_v51  ;;  %vm334_vm2 = vcmp.gt.f32.partialorder %v326_v51, 0.0 }
 0x155   :  { %v329_v52 = vpop.f32.mrf.mxu0 }
 0x156   :  { %v330_v53 = vadd.f32 %v329_v52, %v204_v47  ;;  %v339_v55 = vmul.f32 0.01, %v328_v50  ;;  %vm335_vm1 = vcmp.gt.f32.partialorder %v328_v50, 0.0  ;;  %v342_v1 = vsel %vm334_vm2, %v326_v51, %v338_v58  ;;  %v1706_v51 = vld [vmem:[#allocation11 + $0x8] sm:$0xff]   ;;  %v1707_v52 = vld [vmem:[#allocation11] sm:$0xff]  }
 0x157   :  { %v331_v54 = vpop.f32.mrf.mxu0 }
 0x158   :  { %vm336_vm0 = vcmp.gt.f32.partialorder %v330_v53, 0.0  ;;  %v340_v56 = vmul.f32 0.01, %v330_v53  ;;  %v332_v57 = vadd.f32 %v331_v54, %v208_v46  ;;  %v343_v61 = vsel %vm335_vm1, %v328_v50, %v339_v55  ;;  %v1709_v54 = vld [vmem:[#allocation13 + $0x30] sm:$0xff]   ;;  %v1710_v55 = vld [vmem:[#allocation13 + $0x28] sm:$0xff]  }
 0x15a   :  { %v341_v59 = vmul.f32 0.01, %v332_v57  ;;  %vm337_vm3 = vcmp.gt.f32.partialorder %v332_v57, 0.0  ;;  %v344_v60 = vsel %vm336_vm0, %v330_v53, %v340_v56  ;;  %v1708_v53 = vld [vmem:[#allocation13 + $0x38] sm:$0xff]   ;;  %v1711_v56 = vld [vmem:[#allocation13 + $0x20] sm:$0xff]  }
 0x15b   :  { %v379_v2 = vpack.c.bf16 %v344_v60, %v342_v1 }
 0x15c   :  { %v345_v62 = vsel %vm337_vm3, %v332_v57, %v341_v59  ;;  %v1712_v57 = vld [vmem:[#allocation13 + $0x18] sm:$0xff]   ;;  %v1407_v59 = vld [vmem:[%s2221_s8] ss:$0 sm:$0xff] }
 0x15d   :  { %v380_v63 = vpack.c.bf16 %v345_v62, %v343_v61 }
 0x15f   :  { %515 = vmatprep.mubr.bf16.mxu1 %v380_v63 }
 0x160   :  { %516 = vmatmul.mubr.bf16.vlgmr.msra.gmra.mxu1 %v379_v2 }
 0x161   :  { %1583 = vmatprep.mubr.msk.bf16.mxu1 %vm1983_vm4, %v1982_v37  ;;  %1568 = vmatpush3.bf16.msra.mxu1 %v1692_v7  ;;  %v1718_v7 = vld [vmem:[#allocation14 + $0x74] ss:$8 sps:$4 sm:$0xff]  }
 0x162   :  { %1569 = vmatprep.subr.bf16.mxu1 %v1982_v37 }
 0x165   :  { %1570 = vmatpush3.bf16.msra.mxu1 %v1693_v8  ;;  %v1721_v8 = vld [vmem:[#allocation14 + $0x64] ss:$8 sps:$4 sm:$0xff]  }
 0x166   :  { %1571 = vmatprep.subr.bf16.mxu1 %v1982_v37 }
 0x169   :  { %1572 = vmatpush3.bf16.msra.mxu1 %v1694_v9  ;;  %v1719_v9 = vld [vmem:[#allocation14 + $0x60] ss:$8 sps:$4 sm:$0xff]  }
 0x16a   :  { %1573 = vmatprep.subr.bf16.mxu1 %v1982_v37 }
 0x16d   :  { %1574 = vmatpush3.bf16.msra.mxu1 %v1695_v10  ;;  %v1724_v10 = vld [vmem:[#allocation14 + $0x54] ss:$8 sps:$4 sm:$0xff]  }
 0x16e   :  { %1575 = vmatprep.subr.bf16.mxu1 %v1982_v37 }
 0x171   :  { %1576 = vmatpush3.bf16.msra.mxu1 %v1696_v11  ;;  %v1727_v11 = vld [vmem:[#allocation14 + $0x44] ss:$8 sps:$4 sm:$0xff]  }
 0x172   :  { %1577 = vmatprep.subr.bf16.mxu1 %v1982_v37 }
 0x175   :  { %1578 = vmatpush3.bf16.msra.mxu1 %v1697_v26  ;;  %v1733_v26 = vld [vmem:[#allocation14 + $0x24] ss:$8 sps:$4 sm:$0xff]  }
 0x176   :  { %1579 = vmatprep.subr.bf16.mxu1 %v1982_v37 }
 0x179   :  { %1580 = vmatpush3.bf16.msra.mxu1 %v1698_v27  ;;  %v1731_v27 = vld [vmem:[#allocation14 + $0x20] ss:$8 sps:$4 sm:$0xff]  }
 0x17a   :  { %1581 = vmatprep.subr.bf16.mxu1 %v1982_v37 }
 0x17d   :  { %1582 = vmatpush3.bf16.msra.mxu1 %v1699_v28  ;;  %v1736_v28 = vld [vmem:[#allocation14 + $0x14] ss:$8 sps:$4 sm:$0xff]  }
 0x17e   :  { %1607 = vmatprep.subr.bf16.mxu1 %v1982_v37 }
 0x220   :  { %v1483_v12 = vpop.f32.mrf.mxu1 }
 0x222   :  { %v1484_v14 = vpop.f32.mrf.mxu1 }
 0x223   :  { %v1485_v15 = vadd.f32 %v1484_v14, %v1483_v12  ;;  %v1725_v12 = vld [vmem:[#allocation14 + $0x40] ss:$8 sps:$4 sm:$0xff]   ;;  %v1416_v14 = vld [vmem:[%s2223_s10] ss:$0 sm:$0xff] }
 0x224   :  { %v1486_v16 = vpop.f32.mrf.mxu1 }
 0x225   :  { %v518_v17 = vadd.f32 %v1485_v15, %v1381_v13 }
 0x226   :  { %v1487_v18 = vpop.f32.mrf.mxu1 }
 0x227   :  { %v1488_v19 = vadd.f32 %v1487_v18, %v1486_v16  ;;  %v526_v20 = vmul.f32 0.01, %v518_v17  ;;  %vm524_vm5 = vcmp.gt.f32.partialorder %v518_v17, 0.0 }
 0x229   :  { %v521_v21 = vadd.f32 %v1488_v19, %v1381_v13  ;;  %v528_v23 = vsel %vm524_vm5, %v518_v17, %v526_v20  ;;  %v1730_v13 = vld [vmem:[#allocation14 + $0x34] ss:$8 sps:$4 sm:$0xff]  }
 0x22b   :  { %vm525_vm6 = vcmp.gt.f32.partialorder %v521_v21, 0.0  ;;  %v527_v22 = vmul.f32 0.01, %v521_v21 }
 0x22d   :  { %v529_v24 = vsel %vm525_vm6, %v521_v21, %v527_v22 }
 0x22e   :  { %v547_v25 = vpack.c.bf16 %v529_v24, %v528_v23 }
 0x230   :  { %1564 = vmatmul.mubr.bf16.vlgmr.msra.gmra.mxu0 %v547_v25 }
 0x231   :  { %1603 = vmatprep.mubr.msk.bf16.mxu0 %vm1983_vm4, %v1982_v37  ;;  %1588 = vmatpush3.bf16.msra.mxu0 %v1700_v29  ;;  %v1734_v29 = vld [vmem:[#allocation14 + $0x10] ss:$8 sps:$4 sm:$0xff]  }
 0x232   :  { %1589 = vmatprep.subr.bf16.mxu0 %v1982_v37 }
 0x235   :  { %1590 = vmatpush3.bf16.msra.mxu0 %v1701_v30  ;;  %v1739_v30 = vld [vmem:[#allocation14 + $0x4] ss:$8 sps:$4 sm:$0xff]  }
 0x236   :  { %1591 = vmatprep.subr.bf16.mxu0 %v1982_v37 }
 0x239   :  { %1592 = vmatpush3.bf16.msra.mxu0 %v1702_v31  ;;  %v1737_v31 = vld [vmem:[#allocation14] ss:$8 sps:$4 sm:$0xff]  }
 0x23a   :  { %1593 = vmatprep.subr.bf16.mxu0 %v1982_v37 }
 0x23d   :  { %1594 = vmatpush3.bf16.msra.mxu0 %v1703_v32  ;;  %v1740_v32 = vld [vmem:[#allocation16 + $0x78] sm:$0xff]  }
 0x23e   :  { %1595 = vmatprep.subr.bf16.mxu0 %v1982_v37 }
 0x241   :  { %1596 = vmatpush3.bf16.msra.mxu0 %v1704_v33  ;;  %v1741_v33 = vld [vmem:[#allocation16 + $0x38] sm:$0xff]  }
 0x242   :  { %1597 = vmatprep.subr.bf16.mxu0 %v1982_v37 }
 0x245   :  { %1598 = vmatpush3.bf16.msra.mxu0 %v1705_v34  ;;  %v1742_v34 = vld [vmem:[#allocation16 + $0x70] sm:$0xff]  }
 0x246   :  { %1599 = vmatprep.subr.bf16.mxu0 %v1982_v37 }
 0x249   :  { %1600 = vmatpush3.bf16.msra.mxu0 %v1706_v51 }
 0x24a   :  { %1601 = vmatprep.subr.bf16.mxu0 %v1982_v37 }
 0x24d   :  { %1602 = vmatpush3.bf16.msra.mxu0 %v1707_v52 }
 0x24e   :  { %1109 = vmatprep.subr.bf16.mxu0 %v1718_v7 }
 0x2f0   :  { %v636_v36 = vpop.f32.mrf.mxu0 }
 0x2f1   :  { %v637_v38 = vadd.f32 %v1398_v35, %v636_v36  ;;  %v1744_v36 = vld [vmem:[#allocation16 + $0x68] sm:$0xff]  }
 0x2f2   :  { %v1565_v39 = vpop.f32.mrf.mxu0 }
 0x2f3   :  { %v645_v41 = vmul.f32 0.01, %v637_v38  ;;  %vm643_vm7 = vcmp.gt.f32.partialorder %v637_v38, 0.0  ;;  %v1746_v39 = vld [vmem:[#allocation16 + $0x60] sm:$0xff]  }
 0x2f4   :  { %v639_v40 = vpop.f32.mrf.mxu0 }
 0x2f5   :  { %v640_v45 = vadd.f32 %v1398_v35, %v639_v40  ;;  %v647_v48 = vsel %vm643_vm7, %v637_v38, %v645_v41  ;;  %v1743_v35 = vld [vmem:[#allocation16 + $0x30] sm:$0xff]   ;;  %v1745_v38 = vld [vmem:[#allocation16 + $0x28] sm:$0xff]   ;;  %v1747_v40 = vld [vmem:[#allocation16 + $0x20] sm:$0xff]  }
 0x2f6   :  { %v1566_v46 = vpop.f32.mrf.mxu0  ;;  %v1748_v41 = vld [vmem:[#allocation16 + $0x58] sm:$0xff]  }
 0x2f7   :  { %vm644_vm8 = vcmp.gt.f32.partialorder %v640_v45, 0.0  ;;  %v646_v47 = vmul.f32 0.01, %v640_v45 }
 0x2f9   :  { %v648_v49 = vsel %vm644_vm8, %v640_v45, %v646_v47  ;;  %v1425_v45 = vld [vmem:[%s2225_s12] ss:$0 sm:$0xff] }
 0x2fa   :  { %v666_v50 = vpack.c.bf16 %v648_v49, %v647_v48 }
 0x2fc   :  { %1584 = vmatmul.mubr.bf16.vlgmr.msra.gmra.mxu1 %v666_v50 }
 0x2fd   :  { %1623 = vmatprep.mubr.msk.bf16.mxu1 %vm1983_vm4, %v1982_v37  ;;  %1608 = vmatpush3.bf16.msra.mxu1 %v1708_v53 }
 0x2fe   :  { %1609 = vmatprep.subr.bf16.mxu1 %v1982_v37 }
 0x301   :  { %1610 = vmatpush3.bf16.msra.mxu1 %v1709_v54 }
 0x302   :  { %1611 = vmatprep.subr.bf16.mxu1 %v1982_v37 }
 0x305   :  { %1612 = vmatpush3.bf16.msra.mxu1 %v1710_v55 }
 0x306   :  { %1613 = vmatprep.subr.bf16.mxu1 %v1982_v37 }
 0x309   :  { %1614 = vmatpush3.bf16.msra.mxu1 %v1711_v56 }
 0x30a   :  { %1615 = vmatprep.subr.bf16.mxu1 %v1982_v37 }
 0x30d   :  { %1616 = vmatpush3.bf16.msra.mxu1 %v1712_v57  ;;  %v1749_v57 = vld [vmem:[#allocation16 + $0x18] sm:$0xff]  }
 0x30e   :  { %1617 = vmatprep.subr.bf16.mxu1 %v1982_v37 }
 0x311   :  { %1618 = vmatpush3.bf16.msra.mxu1 %v1713_v3 }
 0x312   :  { %1619 = vmatprep.subr.bf16.mxu1 %v1982_v37 }
 0x315   :  { %1620 = vmatpush3.bf16.msra.mxu1 %v1714_v4 }
 0x316   :  { %1621 = vmatprep.subr.bf16.mxu1 %v1982_v37  ;;  %v1728_v37 = vld [vmem:[#allocation14 + $0x30] ss:$8 sps:$4 sm:$0xff]  }
 0x319   :  { %1622 = vmatpush3.bf16.msra.mxu1 %v1715_v5 }
 0x31a   :  { %1525 = vmatprep.subr.bf16.mxu1 %v1740_v32 }
 0x3bc   :  { %v755_v58 = vpop.f32.mrf.mxu1 }
 0x3bd   :  { %v756_v62 = vadd.f32 %v1407_v59, %v755_v58  ;;  %v1750_v58 = vld [vmem:[#allocation16 + $0x50] sm:$0xff]  }
 0x3be   :  { %v1585_v60 = vpop.f32.mrf.mxu1 }
 0x3bf   :  { %v1752_v60 = vld [vmem:[#allocation16 + $0x48] sm:$0xff]  }
 0x3c0   :  { %v758_v61 = vpop.f32.mrf.mxu1 }
 0x3c1   :  { %v759_v63 = vadd.f32 %v1407_v59, %v758_v61  ;;  %v1751_v59 = vld [vmem:[#allocation16 + $0x10] sm:$0xff]   ;;  %v1753_v61 = vld [vmem:[#allocation16 + $0x8] sm:$0xff]  }
 0x3c2   :  { %v1586_v1 = vpop.f32.mrf.mxu1 }
 0x3c3   :  { %v779_v2 = vpack.c.bf16 %v759_v63, %v756_v62  ;;  %v1754_v62 = vld [vmem:[#allocation16 + $0x40] sm:$0xff]   ;;  %v1016_v1 = vld [vmem:[%s2227_s14] sm:$0x3] }
 0x3c4   :  { %v1755_v63 = vld [vmem:[#allocation16] sm:$0xff]   ;;  %v1022_v3 = vrot.slane %v1016_v1, %v203_v44 }
 0x3c5   :  { %1604 = vmatmul.mubr.bf16.vlgmr.msra.gmra.mxu0 %v779_v2  ;;  %v1026_v2 = vrot.slane %v1016_v1, %v207_v43 }
 0x3c6   :  { %1141 = vmatprep.mubr.bf16.mxu0 %v1981_v0  ;;  %1110 = vmatpush1.bf16.msra.mxu0 %v1716_v6  ;;  %v1722_v0 = vld [vmem:[#allocation14 + $0x50] ss:$8 sps:$4 sm:$0xff]  }
 0x3c7   :  { %1111 = vmatprep.subr.bf16.mxu0 %v1721_v8 }
 0x3ca   :  { %1112 = vmatpush1.bf16.msra.mxu0 %v1719_v9 }
 0x3cb   :  { %1113 = vmatprep.subr.bf16.mxu0 %v1724_v10 }
 0x3ce   :  { %1114 = vmatpush1.bf16.msra.mxu0 %v1722_v0 }
 0x3cf   :  { %1115 = vmatprep.subr.bf16.mxu0 %v1727_v11 }
 0x3d2   :  { %1116 = vmatpush1.bf16.msra.mxu0 %v1725_v12 }
 0x3d3   :  { %1117 = vmatprep.subr.bf16.mxu0 %v1730_v13 }
 0x3d6   :  { %1118 = vmatpush1.bf16.msra.mxu0 %v1728_v37 }
 0x3d7   :  { %1119 = vmatprep.subr.bf16.mxu0 %v1733_v26 }
 0x3da   :  { %1120 = vmatpush1.bf16.msra.mxu0 %v1731_v27 }
 0x3db   :  { %1121 = vmatprep.subr.bf16.mxu0 %v1736_v28 }
 0x3de   :  { %1122 = vmatpush1.bf16.msra.mxu0 %v1734_v29 }
 0x3df   :  { %1123 = vmatprep.subr.bf16.mxu0 %v1739_v30 }
 0x3e2   :  { %1124 = vmatpush1.bf16.msra.mxu0 %v1737_v31 }
 0x485   :  { %v868_v15 = vpop.f32.mrf.mxu0 }
 0x486   :  { %v869_v16 = vadd.f32 %v1416_v14, %v868_v15 }
 0x487   :  { %v1605_v17 = vpop.f32.mrf.mxu0 }
 0x488   :  { %v877_v19 = vmul.f32 0.01, %v869_v16  ;;  %vm875_vm9 = vcmp.gt.f32.partialorder %v869_v16, 0.0 }
 0x489   :  { %v871_v18 = vpop.f32.mrf.mxu0 }
 0x48a   :  { %v872_v20 = vadd.f32 %v1416_v14, %v871_v18  ;;  %v879_v23 = vsel %vm875_vm9, %v869_v16, %v877_v19  ;;  %v1450_v18 = vld [vmem:[%s2229_s16] ss:$0 sm:$0xff] }
 0x48b   :  { %v1606_v21 = vpop.f32.mrf.mxu0 }
 0x48c   :  { %vm876_vm10 = vcmp.gt.f32.partialorder %v872_v20, 0.0  ;;  %v878_v22 = vmul.f32 0.01, %v872_v20 }
 0x48e   :  { %v880_v24 = vsel %vm876_vm10, %v872_v20, %v878_v22 }
 0x48f   :  { %v898_v25 = vpack.c.bf16 %v880_v24, %v879_v23 }
 0x491   :  { %1624 = vmatmul.mubr.bf16.vlgmr.msra.gmra.mxu1 %v898_v25 }
 0x492   :  { %1526 = vmatpush3.bf16.msra.mxu1 %v1741_v33 }
 0x493   :  { %1527 = vmatprep.subr.bf16.mxu1 %v1742_v34 }
 0x496   :  { %1528 = vmatpush3.bf16.msra.mxu1 %v1743_v35 }
 0x497   :  { %1529 = vmatprep.subr.bf16.mxu1 %v1744_v36 }
 0x49a   :  { %1530 = vmatpush3.bf16.msra.mxu1 %v1745_v38 }
 0x49b   :  { %1531 = vmatprep.subr.bf16.mxu1 %v1746_v39 }
 0x49e   :  { %1532 = vmatpush3.bf16.msra.mxu1 %v1747_v40 }
 0x49f   :  { %1533 = vmatprep.subr.bf16.mxu1 %v1748_v41 }
 0x4a2   :  { %1534 = vmatpush3.bf16.msra.mxu1 %v1749_v57 }
 0x4a3   :  { %1535 = vmatprep.subr.bf16.mxu1 %v1750_v58 }
 0x4a6   :  { %1536 = vmatpush3.bf16.msra.mxu1 %v1751_v59 }
 0x4a7   :  { %1537 = vmatprep.subr.bf16.mxu1 %v1752_v60 }
 0x4aa   :  { %1538 = vmatpush3.bf16.msra.mxu1 %v1753_v61 }
 0x4ab   :  { %1539 = vmatprep.subr.bf16.mxu1 %v1754_v62 }
 0x4ae   :  { %1540 = vmatpush3.bf16.msra.mxu1 %v1755_v63 }
 0x551   :  { %v987_v46 = vpop.f32.mrf.mxu1 }
 0x552   :  { %v988_v47 = vadd.f32 %v1425_v45, %v987_v46 }
 0x553   :  { %v1625_v48 = vpop.f32.mrf.mxu1 }
 0x554   :  { %v996_v50 = vmul.f32 0.01, %v988_v47  ;;  %vm994_vm11 = vcmp.gt.f32.partialorder %v988_v47, 0.0 }
 0x555   :  { %v990_v49 = vpop.f32.mrf.mxu1 }
 0x556   :  { %v991_v51 = vadd.f32 %v1425_v45, %v990_v49  ;;  %v998_v54 = vsel %vm994_vm11, %v988_v47, %v996_v50 }
 0x557   :  { %v1626_v52 = vpop.f32.mrf.mxu1 }
 0x558   :  { %vm995_vm12 = vcmp.gt.f32.partialorder %v991_v51, 0.0  ;;  %v997_v53 = vmul.f32 0.01, %v991_v51 }
 0x55a   :  { %v999_v55 = vsel %vm995_vm12, %v991_v51, %v997_v53 }
 0x55b   :  { %v1017_v56 = vpack.c.bf16 %v999_v55, %v998_v54 }
 0x55d   :  { %1142 = vmatmul.mubr.bf16.vlgmr.msra.gmra.mxu0 %v1017_v56 }
 0x61d   :  { %v1143_v4 = vpop.f32.mrf.mxu0 }
 0x61e   :  { %v1144_v7 = vadd.f32 %v1143_v4, %v1022_v3 }
 0x61f   :  { %v1145_v5 = vpop.f32.mrf.mxu0 }
 0x620   :  { %v1146_v6 = vadd.f32 %v1145_v5, %v1026_v2  ;;  %v1156_v13 = vmul.f32 0.01, %v1144_v7  ;;  %vm1152_vm15 = vcmp.gt.f32.partialorder %v1144_v7, 0.0 }
 0x621   :  { %v1147_v8 = vpop.f32.mrf.mxu0 }
 0x622   :  { %v1148_v9 = vadd.f32 %v1147_v8, %v1022_v3  ;;  %v1157_v0 = vmul.f32 0.01, %v1146_v6  ;;  %vm1153_vm14 = vcmp.gt.f32.partialorder %v1146_v6, 0.0  ;;  %v1160_v44 = vsel %vm1152_vm15, %v1144_v7, %v1156_v13 }
 0x623   :  { %v1149_v10 = vpop.f32.mrf.mxu0 }
 0x624   :  { %vm1154_vm13 = vcmp.gt.f32.partialorder %v1148_v9, 0.0  ;;  %v1158_v11 = vmul.f32 0.01, %v1148_v9  ;;  %v1150_v12 = vadd.f32 %v1149_v10, %v1026_v2  ;;  %v1161_v14 = vsel %vm1153_vm14, %v1146_v6, %v1157_v0 }
 0x626   :  { %vm1155_vm0 = vcmp.gt.f32.partialorder %v1150_v12, 0.0  ;;  %v1159_v37 = vmul.f32 0.01, %v1150_v12  ;;  %v1162_v43 = vsel %vm1154_vm13, %v1148_v9, %v1158_v11 }
 0x627   :  { %v1197_v16 = vpack.c.bf16 %v1162_v43, %v1160_v44 }
 0x628   :  { %v1163_v42 = vsel %vm1155_vm0, %v1150_v12, %v1159_v37 }
 0x629   :  { %v1198_v15 = vpack.c.bf16 %v1163_v42, %v1161_v14 }
 0x62b   :  { %1333 = vmatprep.mubr.bf16.mxu1 %v1198_v15 }
 0x62c   :  { %1334 = vmatmul.mubr.bf16.vlgmr.msra.gmra.mxu1 %v1197_v16 }
 0x6ec   :  { %v1541_v17 = vpop.f32.mrf.mxu1 }
 0x6ee   :  { %v1542_v19 = vpop.f32.mrf.mxu1 }
 0x6ef   :  { %v1543_v20 = vadd.f32 %v1542_v19, %v1541_v17 }
 0x6f0   :  { %v1544_v21 = vpop.f32.mrf.mxu1 }
 0x6f1   :  { %v1336_v22 = vadd.f32 %v1543_v20, %v1450_v18 }
 0x6f2   :  { %v1545_v23 = vpop.f32.mrf.mxu1 }
 0x6f3   :  { %1342 = vst [vmem:[#allocation17] sm:$0xff] %v1336_v22  ;;  %v1546_v24 = vadd.f32 %v1545_v23, %v1544_v21 }
 0x6f5   :  { %v1339_v25 = vadd.f32 %v1546_v24, %v1450_v18 }
 0x6f7   :  { %1343 = vst [vmem:[#allocation17 + $0x8] sm:$0xff] %v1339_v25 }
 0x6f8   :  { %1947 = shalt.err (!%p1944_p7)
}
 0x6f9   :  { %1355 = dma.vmem_to_hbm [thread:$0]  %s1350_s9, 256, %s2230_s17, [#allocation4], %s1969_s27, %s1969_s27, %s1970_s28  }
 0x6fa   :  { %1966 = dma.done.wait [#allocation4], 256  }
 0x6fb   :  { %1967 = vsyncadd [#allocation4], 4294967040 }
 0x6fc   :  { %1359 = vsyncpa [#allocation3], 1 }
 0x6fd   :  { %1360 = vsyncpa [#allocation6], 1 }
 0x6fe   :  { %1361 = vsyncpa [#allocation9], 1 }
 0x6ff   :  { %1362 = vsyncpa [#allocation12], 1 }
 0x700   :  { %1363 = vsyncpa [#allocation15], 1 }
 0x701   :  { %1364 = vsyncpa [#allocation4], 1 }

// kernel: tpu_custom_call.1
= control target key start
LH: loop header
LB: loop body
LE: loop exit
PB: predicated region body
PF: predicated region fallthrough
CT: control target
= control target key end

     0   :  { %s2213_s0 = inlined_call_operand.hbm [shape: f32[16,128], index: 0, kind: input, shape index: {}]   ;;  %s2214_s1 = inlined_call_operand.hbm [shape: bf16[128,256], index: 1, kind: input, shape index: {}]   ;;  %s2215_s2 = inlined_call_operand.vmem [shape: f32[1,256], index: 2, kind: input, shape index: {}]   ;;  %s2216_s3 = inlined_call_operand.hbm [shape: bf16[256,128], index: 3, kind: input, shape index: {}]   ;;  %s2217_s4 = inlined_call_operand.vmem [shape: f32[1,128], index: 4, kind: input, shape index: {}]   ;;  %s2218_s5 = inlined_call_operand.hbm [shape: bf16[128,128], index: 5, kind: input, shape index: {}]   ;;  %s2219_s6 = inlined_call_operand.vmem [shape: f32[1,128], index: 6, kind: input, shape index: {}]   ;;  %s2220_s7 = inlined_call_operand.hbm [shape: bf16[128,128], index: 7, kind: input, shape index: {}]   ;;  %s2221_s8 = inlined_call_operand.vmem [shape: f32[1,128], index: 8, kind: input, shape index: {}]   ;;  %s2222_s9 = inlined_call_operand.hbm [shape: bf16[128,128], index: 9, kind: input, shape index: {}]   ;;  %s2223_s10 = inlined_call_operand.vmem [shape: f32[1,128], index: 10, kind: input, shape index: {}]   ;;  %s2224_s11 = inlined_call_operand.hbm [shape: bf16[128,128], index: 11, kind: input, shape index: {}]   ;;  %s2225_s12 = inlined_call_operand.vmem [shape: f32[1,128], index: 12, kind: input, shape index: {}]   ;;  %s2226_s13 = inlined_call_operand.hbm [shape: bf16[128,256], index: 13, kind: input, shape index: {}]   ;;  %s2227_s14 = inlined_call_operand.vmem [shape: f32[1,256], index: 14, kind: input, shape index: {}]   ;;  %s2228_s15 = inlined_call_operand.hbm [shape: bf16[256,128], index: 15, kind: input, shape index: {}]   ;;  %s2229_s16 = inlined_call_operand.vmem [shape: f32[1,128], index: 16, kind: input, shape index: {}]   ;;  %s2230_s17 = inlined_call_operand.hbm [shape: f32[16,128], index: 17, kind: output, shape index: {}]  }
   0x1   :  { %2231 = sst [smem:[#allocation24_spill]] %s2213_s0 }
   0x2   :  { %2232 = sst [smem:[#allocation25_spill]] %s2214_s1 }
   0x3   :  { %22 = vsyncpa [#allocation3], 0 }
   0x4   :  { %23 = vsyncpa [#allocation6], 0 }
   0x5   :  { %24 = vsyncpa [#allocation9], 0 }
   0x6   :  { %25 = vsyncpa [#allocation12], 0 }
   0x7   :  { %26 = vsyncpa [#allocation15], 0 }
   0x8   :  { %27 = vsyncpa [#allocation4], 0  ;;  %s1968_s24 = smov [#allocation5]  }
   0x9   :  { %s45_s25 = sshll.u32 %s1968_s24, 4  ;;  %s46_s25 = int_to_ptr.vmem [resolvable:$true] %s45_s25 }
   0xa   :  { %s1764_s26 = scalar_lea.vmem %s46_s25, 2048  ;;  %p1769_p1 = scmp.lt.s32.totalorder %s46_s25, %s46_s25 }
   0xb   :  { %p1765_p0 = scmp.ne.s32.totalorder %s46_s25, %s1764_s26  ;;  %p1770_p2 = scmp.lt.s32.totalorder %s1764_s26, %s1764_s26 }
   0xd   :  { %p1771_p3 = por %p1770_p2, %p1769_p1 }
   0xf   :  { %p1772_p4 = pnand %p1771_p3, %p1765_p0 }
  0x11   :  { %1775 = shalt.err (!%p1772_p4)
}
  0x12   :  { %s1969_s27 = smov 128   ;;  %s1970_s28 = smov 8  }
  0x13   :  { %s2233_s30 = sld [smem:[#allocation25_spill]]  ;;  %s1971_s18 = smov [#allocation8]  }
  0x14   :  { %s73_s19 = sshll.u32 %s1971_s18, 4  ;;  %s1972_s1 = smov [#allocation11]   ;;  %s74_s19 = int_to_ptr.vmem [resolvable:$true] %s73_s19 }
  0x15   :  { %s101_s20 = sshll.u32 %s1972_s1, 4  ;;  %s1784_s21 = scalar_lea.vmem %s74_s19, 1024  ;;  %s102_s20 = int_to_ptr.vmem [resolvable:$true] %s101_s20 }
  0x16   :  { %p1785_p5 = scmp.ne.s32.totalorder %s74_s19, %s1784_s21  ;;  %p1789_p6 = scmp.lt.s32.totalorder %s74_s19, %s74_s19 }
  0x17   :  { %p1790_p7 = scmp.lt.s32.totalorder %s1784_s21, %s1784_s21 }
  0x19   :  { %51 = dma.hbm_to_vmem [thread:$0]  %s2233_s30, 2048, %s46_s25, [#allocation6], %s1969_s27, %s1969_s27, %s1970_s28  }
  0x1a   :  { %p1791_p8 = por %p1790_p7, %p1789_p6 }
  0x1c   :  { %p1792_p9 = pnand %p1791_p8, %p1785_p5 }
  0x1e   :  { %1795 = shalt.err (!%p1792_p9)
}
  0x1f   :  { %s1973_s22 = smov 64   ;;  %s1974_s23 = smov 4  }
  0x20   :  { %79 = dma.hbm_to_vmem [thread:$0]  %s2218_s5, 1024, %s74_s19, [#allocation9], %s1973_s22, %s1973_s22, %s1974_s23  }
  0x21   :  { %s1804_s25 = scalar_lea.vmem %s102_s20, 1024  ;;  %p1809_p11 = scmp.lt.s32.totalorder %s102_s20, %s102_s20 }
  0x22   :  { %p1805_p10 = scmp.ne.s32.totalorder %s102_s20, %s1804_s25  ;;  %p1810_p12 = scmp.lt.s32.totalorder %s1804_s25, %s1804_s25 }
  0x24   :  { %p1811_p13 = por %p1810_p12, %p1809_p11 }
  0x26   :  { %p1812_p0 = pnand %p1811_p13, %p1805_p10 }
  0x28   :  { %1815 = shalt.err (!%p1812_p0)
}
  0x29   :  { %107 = dma.hbm_to_vmem [thread:$0]  %s2222_s9, 1024, %s102_s20, [#allocation12], %s1973_s22, %s1973_s22, %s1974_s23  }
  0x2a   :  { %s1975_s30 = smov [#allocation14]   ;;  %s1976_s1 = smov [#allocation2]  }
  0x2b   :  { %s129_s18 = sshll.u32 %s1975_s30, 4  ;;  %s33_s5 = sshll.u32 %s1976_s1, 4  ;;  %s130_s18 = int_to_ptr.vmem [resolvable:$true] %s129_s18  ;;  %s34_s5 = int_to_ptr.vmem [resolvable:$true] %s33_s5 }
  0x2c   :  { %s1824_s19 = scalar_lea.vmem %s130_s18, 2048  ;;  %p1829_p2 = scmp.lt.s32.totalorder %s130_s18, %s130_s18 }
  0x2d   :  { %p1825_p1 = scmp.ne.s32.totalorder %s130_s18, %s1824_s19  ;;  %p1830_p3 = scmp.lt.s32.totalorder %s1824_s19, %s1824_s19 }
  0x2f   :  { %p1831_p4 = por %p1830_p3, %p1829_p2 }
  0x31   :  { %p1832_p5 = pnand %p1831_p4, %p1825_p1 }
  0x33   :  { %1835 = shalt.err (!%p1832_p5)
}
  0x34   :  { %135 = dma.hbm_to_vmem [thread:$0]  %s2226_s13, 2048, %s130_s18, [#allocation15], %s1969_s27, %s1969_s27, %s1970_s28  }
  0x35   :  { %s1844_s9 = scalar_lea.vmem %s34_s5, 256  ;;  %p1849_p7 = scmp.lt.s32.totalorder %s34_s5, %s34_s5 }
  0x36   :  { %p1845_p6 = scmp.ne.s32.totalorder %s34_s5, %s1844_s9  ;;  %p1850_p8 = scmp.lt.s32.totalorder %s1844_s9, %s1844_s9 }
  0x38   :  { %p1851_p9 = por %p1850_p8, %p1849_p7 }
  0x3a   :  { %p1852_p10 = pnand %p1851_p9, %p1845_p6 }
  0x3c   :  { %1855 = shalt.err (!%p1852_p10)
}
  0x3d   :  { %s2234_s25 = sld [smem:[#allocation24_spill]]  ;;  %s1977_s29 = smov [#allocation7]  }
  0x3e   :  { %s59_s0 = sshll.u32 %s1977_s29, 4  ;;  %s1978_s30 = smov [#allocation10]   ;;  %s60_s0 = int_to_ptr.vmem [resolvable:$true] %s59_s0 }
  0x3f   :  { %s87_s13 = sshll.u32 %s1978_s30, 4  ;;  %s1864_s18 = scalar_lea.vmem %s60_s0, 2048  ;;  %s88_s13 = int_to_ptr.vmem [resolvable:$true] %s87_s13 }
  0x40   :  { %p1865_p11 = scmp.ne.s32.totalorder %s60_s0, %s1864_s18  ;;  %p1869_p12 = scmp.lt.s32.totalorder %s60_s0, %s60_s0 }
  0x41   :  { %p1870_p13 = scmp.lt.s32.totalorder %s1864_s18, %s1864_s18 }
  0x43   :  { %39 = dma.hbm_to_vmem [thread:$0]  %s2234_s25, 256, %s34_s5, [#allocation3], %s1969_s27, %s1969_s27, %s1970_s28  }
  0x44   :  { %p1871_p0 = por %p1870_p13, %p1869_p12 }
  0x46   :  { %p1872_p1 = pnand %p1871_p0, %p1865_p11 }
  0x48   :  { %1875 = shalt.err (!%p1872_p1)
}
  0x49   :  { %65 = dma.hbm_to_vmem [thread:$0]  %s2216_s3, 2048, %s60_s0, [#allocation6], %s1973_s22, %s1973_s22, %s1974_s23  }
  0x4a   :  { %s1884_s5 = scalar_lea.vmem %s88_s13, 1024  ;;  %p1889_p3 = scmp.lt.s32.totalorder %s88_s13, %s88_s13 }
  0x4b   :  { %p1885_p2 = scmp.ne.s32.totalorder %s88_s13, %s1884_s5  ;;  %p1890_p4 = scmp.lt.s32.totalorder %s1884_s5, %s1884_s5 }
  0x4d   :  { %p1891_p5 = por %p1890_p4, %p1889_p3 }
  0x4f   :  { %p1892_p6 = pnand %p1891_p5, %p1885_p2 }
  0x51   :  { %1895 = shalt.err (!%p1892_p6)
}
  0x52   :  { %93 = dma.hbm_to_vmem [thread:$0]  %s2220_s7, 1024, %s88_s13, [#allocation9], %s1973_s22, %s1973_s22, %s1974_s23  }
  0x53   :  { %s1979_s9 = smov [#allocation13]   ;;  %s1980_s26 = smov [#allocation16]  }
  0x54   :  { %s115_s20 = sshll.u32 %s1979_s9, 4  ;;  %s143_s3 = sshll.u32 %s1980_s26, 4  ;;  %s116_s20 = int_to_ptr.vmem [resolvable:$true] %s115_s20  ;;  %s144_s3 = int_to_ptr.vmem [resolvable:$true] %s143_s3 }
  0x55   :  { %s1904_s25 = scalar_lea.vmem %s116_s20, 1024  ;;  %p1909_p8 = scmp.lt.s32.totalorder %s116_s20, %s116_s20 }
  0x56   :  { %p1905_p7 = scmp.ne.s32.totalorder %s116_s20, %s1904_s25  ;;  %p1910_p9 = scmp.lt.s32.totalorder %s1904_s25, %s1904_s25 }
  0x58   :  { %p1911_p10 = por %p1910_p9, %p1909_p8 }
  0x5a   :  { %p1912_p11 = pnand %p1911_p10, %p1905_p7 }
  0x5c   :  { %1915 = shalt.err (!%p1912_p11)
}
  0x5d   :  { %121 = dma.hbm_to_vmem [thread:$0]  %s2224_s11, 1024, %s116_s20, [#allocation12], %s1973_s22, %s1973_s22, %s1974_s23  }
  0x5e   :  { %s1924_s7 = scalar_lea.vmem %s144_s3, 2048  ;;  %p1929_p13 = scmp.lt.s32.totalorder %s144_s3, %s144_s3 }
  0x5f   :  { %p1925_p12 = scmp.ne.s32.totalorder %s144_s3, %s1924_s7  ;;  %p1930_p0 = scmp.lt.s32.totalorder %s1924_s7, %s1924_s7 }
  0x61   :  { %p1931_p1 = por %p1930_p0, %p1929_p13 }
  0x63   :  { %p1932_p2 = pnand %p1931_p1, %p1925_p12 }
  0x65   :  { %1935 = shalt.err (!%p1932_p2)
}
  0x66   :  { %149 = dma.hbm_to_vmem [thread:$0]  %s2228_s15, 2048, %s144_s3, [#allocation15], %s1973_s22, %s1973_s22, %s1974_s23  }
  0x67   :  { %1956 = dma.done.wait [#allocation3], 256  }
  0x68   :  { %1957 = vsyncadd [#allocation3], 4294967040 }
  0x69   :  { %1958 = dma.done.wait [#allocation6], 4096  }
  0x6a   :  { %1959 = vsyncadd [#allocation6], 4294963200 }
  0x6b   :  { %1960 = dma.done.wait [#allocation9], 2048  }
  0x6c   :  { %1961 = vsyncadd [#allocation9], 4294965248 }
  0x6d   :  { %1962 = dma.done.wait [#allocation12], 2048  }
  0x6e   :  { %1963 = vsyncadd [#allocation12], 4294965248 }
  0x6f   :  { %1964 = dma.done.wait [#allocation15], 4096  }
  0x70   :  { %1965 = vsyncadd [#allocation15], 4294963200  ;;  %v1981_v0 = vmov 0   ;;  %v1644_v1 = vld [vmem:[#allocation5 + $0x74] ss:$8 sps:$4 sm:$0xff]   ;;  %v1672_v16 = vld [vmem:[#allocation7 + $0x68] sm:$0xff]   ;;  %v201_v41 = vlaneseq }
  0x71   :  { %323 = vmatprep.mubr.bf16.mxu0 %v1981_v0  ;;  %v1646_v2 = vld [vmem:[#allocation5 + $0x70] ss:$8 sps:$4 sm:$0xff]   ;;  %291 = vmatprep.subr.bf16.mxu0 %v1644_v1  ;;  %v1647_v3 = vld [vmem:[#allocation5 + $0x64] ss:$8 sps:$4 sm:$0xff]   ;;  %v1649_v4 = vld [vmem:[#allocation5 + $0x60] ss:$8 sps:$4 sm:$0xff]  }
  0x72   :  { %292 = vmatpush1.bf16.msra.mxu0 %v1646_v2  ;;  %v1650_v5 = vld [vmem:[#allocation5 + $0x54] ss:$8 sps:$4 sm:$0xff]   ;;  %v1652_v6 = vld [vmem:[#allocation5 + $0x50] ss:$8 sps:$4 sm:$0xff]   ;;  %v1653_v7 = vld [vmem:[#allocation5 + $0x44] ss:$8 sps:$4 sm:$0xff]  }
  0x73   :  { %293 = vmatprep.subr.bf16.mxu0 %v1647_v3  ;;  %v1655_v8 = vld [vmem:[#allocation5 + $0x40] ss:$8 sps:$4 sm:$0xff]   ;;  %v1656_v9 = vld [vmem:[#allocation5 + $0x34] ss:$8 sps:$4 sm:$0xff]   ;;  %v1658_v11 = vld [vmem:[#allocation5 + $0x30] ss:$8 sps:$4 sm:$0xff]  }
  0x74   :  { %v1668_v10 = vld [vmem:[#allocation7 + $0x78] sm:$0xff]   ;;  %v1659_v13 = vld [vmem:[#allocation5 + $0x24] ss:$8 sps:$4 sm:$0xff]   ;;  %v1670_v14 = vld [vmem:[#allocation7 + $0x70] sm:$0xff]   ;;  %v1982_v37 = vmov 0.0   ;;  %v2136_v42 = vshrl.u32 %v201_v41, 7 }
  0x75   :  { %v1669_v12 = vld [vmem:[#allocation7 + $0x38] sm:$0xff]   ;;  %1467 = vmatprep.subr.bf16.mxu1 %v1668_v10  ;;  %v1671_v15 = vld [vmem:[#allocation7 + $0x30] sm:$0xff]   ;;  %v1661_v17 = vld [vmem:[#allocation5 + $0x20] ss:$8 sps:$4 sm:$0xff]   ;;  %vm1983_vm4 = vmmov 0   ;;  %s1984_s24 = smov [#allocation17]  }
  0x76   :  { %294 = vmatpush1.bf16.msra.mxu0 %v1649_v4  ;;  %1468 = vmatpush3.bf16.msra.mxu1 %v1669_v12  ;;  %v1673_v18 = vld [vmem:[#allocation7 + $0x28] sm:$0xff]   ;;  %v1662_v19 = vld [vmem:[#allocation5 + $0x14] ss:$8 sps:$4 sm:$0xff]   ;;  %v1674_v20 = vld [vmem:[#allocation7 + $0x60] sm:$0xff]   ;;  %v207_v43 = vsub.s32 1, %v2136_v42  ;;  %v203_v44 = vsub.s32 0, %v2136_v42 }
  0x77   :  { %295 = vmatprep.subr.bf16.mxu0 %v1650_v5  ;;  %1469 = vmatprep.subr.bf16.mxu1 %v1670_v14  ;;  %v1664_v21 = vld [vmem:[#allocation5 + $0x10] ss:$8 sps:$4 sm:$0xff]   ;;  %v1675_v22 = vld [vmem:[#allocation7 + $0x20] sm:$0xff]   ;;  %v1680_v32 = vld [vmem:[#allocation7 + $0x48] sm:$0xff]   ;;  %s1349_s9 = sshll.u32 %s1984_s24, 4  ;;  %s1350_s9 = int_to_ptr.vmem [resolvable:$true] %s1349_s9 }
  0x78   :  { %v1665_v23 = vld [vmem:[#allocation5 + $0x4] ss:$8 sps:$4 sm:$0xff]   ;;  %v1676_v24 = vld [vmem:[#allocation7 + $0x58] sm:$0xff]   ;;  %v1667_v25 = vld [vmem:[#allocation5] ss:$8 sps:$4 sm:$0xff]   ;;  %s1936_s20 = scalar_lea.vmem %s1350_s9, 256  ;;  %p1941_p4 = scmp.lt.s32.totalorder %s1350_s9, %s1350_s9 }
  0x79   :  { %v180_v26 = vld [vmem:[#allocation2] sm:$0xff]  ;;  %v181_v27 = vld [vmem:[#allocation2 + $0x8] sm:$0xff]  ;;  %v1681_v33 = vld [vmem:[#allocation7 + $0x8] sm:$0xff]   ;;  %p1937_p3 = scmp.ne.s32.totalorder %s1350_s9, %s1936_s20  ;;  %p1942_p5 = scmp.lt.s32.totalorder %s1936_s20, %s1936_s20 }
  0x7a   :  { %296 = vmatpush1.bf16.msra.mxu0 %v1652_v6  ;;  %1470 = vmatpush3.bf16.msra.mxu1 %v1671_v15  ;;  %v199_v28 = vpack.c.bf16 %v181_v27, %v180_v26  ;;  %v1677_v29 = vld [vmem:[#allocation7 + $0x18] sm:$0xff]   ;;  %v1678_v30 = vld [vmem:[#allocation7 + $0x50] sm:$0xff]   ;;  %v1682_v34 = vld [vmem:[#allocation7 + $0x40] sm:$0xff]  }
  0x7b   :  { %297 = vmatprep.subr.bf16.mxu0 %v1653_v7  ;;  %1471 = vmatprep.subr.bf16.mxu1 %v1672_v16  ;;  %v1679_v31 = vld [vmem:[#allocation7 + $0x10] sm:$0xff]   ;;  %v1683_v35 = vld [vmem:[#allocation7] sm:$0xff]   ;;  %v1684_v36 = vld [vmem:[#allocation8 + $0x38] sm:$0xff]   ;;  %p1943_p6 = por %p1942_p5, %p1941_p4 }
  0x7c   :  { %v1685_v38 = vld [vmem:[#allocation8 + $0x30] sm:$0xff]   ;;  %v1686_v39 = vld [vmem:[#allocation8 + $0x28] sm:$0xff]   ;;  %v1687_v40 = vld [vmem:[#allocation8 + $0x20] sm:$0xff]  }
  0x7d   :  { %v198_v45 = vld [vmem:[%s2215_s2] sm:$0x3]  ;;  %v1688_v3 = vld [vmem:[#allocation8 + $0x18] sm:$0xff]   ;;  %v1690_v5 = vld [vmem:[#allocation8 + $0x8] sm:$0xff]   ;;  %p1944_p7 = pnand %p1943_p6, %p1937_p3 }
  0x7e   :  { %298 = vmatpush1.bf16.msra.mxu0 %v1655_v8  ;;  %1472 = vmatpush3.bf16.msra.mxu1 %v1673_v18  ;;  %v208_v46 = vrot.slane %v198_v45, %v207_v43  ;;  %v204_v47 = vrot.slane %v198_v45, %v203_v44  ;;  %v1689_v4 = vld [vmem:[#allocation8 + $0x10] sm:$0xff]   ;;  %v1691_v6 = vld [vmem:[#allocation8] sm:$0xff]   ;;  %v1692_v7 = vld [vmem:[#allocation10 + $0x38] sm:$0xff]  }
  0x7f   :  { %299 = vmatprep.subr.bf16.mxu0 %v1656_v9  ;;  %1473 = vmatprep.subr.bf16.mxu1 %v1674_v20  ;;  %v1693_v8 = vld [vmem:[#allocation10 + $0x30] sm:$0xff]   ;;  %v1694_v9 = vld [vmem:[#allocation10 + $0x28] sm:$0xff]   ;;  %v1695_v10 = vld [vmem:[#allocation10 + $0x20] sm:$0xff]  }
  0x80   :  { %v1697_v26 = vld [vmem:[#allocation10 + $0x10] sm:$0xff]   ;;  %v1698_v27 = vld [vmem:[#allocation10 + $0x8] sm:$0xff]  }
  0x82   :  { %300 = vmatpush1.bf16.msra.mxu0 %v1658_v11  ;;  %1474 = vmatpush3.bf16.msra.mxu1 %v1675_v22  ;;  %v1696_v11 = vld [vmem:[#allocation10 + $0x18] sm:$0xff]  }
  0x83   :  { %301 = vmatprep.subr.bf16.mxu0 %v1659_v13  ;;  %1475 = vmatprep.subr.bf16.mxu1 %v1676_v24  ;;  %v1381_v13 = vld [vmem:[%s2217_s4] ss:$0 sm:$0xff] }
  0x86   :  { %302 = vmatpush1.bf16.msra.mxu0 %v1661_v17  ;;  %1476 = vmatpush3.bf16.msra.mxu1 %v1677_v29  ;;  %v1700_v29 = vld [vmem:[#allocation11 + $0x38] sm:$0xff]  }
  0x87   :  { %303 = vmatprep.subr.bf16.mxu0 %v1662_v19  ;;  %1477 = vmatprep.subr.bf16.mxu1 %v1678_v30  ;;  %v1701_v30 = vld [vmem:[#allocation11 + $0x30] sm:$0xff]  }
  0x8a   :  { %304 = vmatpush1.bf16.msra.mxu0 %v1664_v21  ;;  %1478 = vmatpush3.bf16.msra.mxu1 %v1679_v31  ;;  %v1702_v31 = vld [vmem:[#allocation11 + $0x28] sm:$0xff]  }
  0x8b   :  { %305 = vmatprep.subr.bf16.mxu0 %v1665_v23  ;;  %1479 = vmatprep.subr.bf16.mxu1 %v1680_v32  ;;  %v1703_v32 = vld [vmem:[#allocation11 + $0x20] sm:$0xff]  }
  0x8e   :  { %306 = vmatpush1.bf16.msra.mxu0 %v1667_v25  ;;  %1480 = vmatpush3.bf16.msra.mxu1 %v1681_v33  ;;  %v1704_v33 = vld [vmem:[#allocation11 + $0x18] sm:$0xff]  }
  0x8f   :  { %1481 = vmatprep.subr.bf16.mxu1 %v1682_v34  ;;  %1547 = vmatprep.subr.bf16.mxu0 %v1982_v37  ;;  %v1705_v34 = vld [vmem:[#allocation11 + $0x10] sm:$0xff]  }
  0x91   :  { %324 = vmatmul.mubr.bf16.vlgmr.msra.gmra.mxu0 %v199_v28  ;;  %v1699_v28 = vld [vmem:[#allocation10] sm:$0xff]  }
  0x92   :  { %1482 = vmatpush3.bf16.msra.mxu1 %v1683_v35  ;;  %1548 = vmatpush3.bf16.msra.mxu0 %v1684_v36  ;;  %v1398_v35 = vld [vmem:[%s2219_s6] ss:$0 sm:$0xff] }
  0x93   :  { %1567 = vmatprep.subr.bf16.mxu1 %v1982_v37  ;;  %1549 = vmatprep.subr.bf16.mxu0 %v1982_v37 }
  0x94   :  { %1563 = vmatprep.mubr.msk.bf16.mxu0 %vm1983_vm4, %v1982_v37 }
  0x96   :  { %1550 = vmatpush3.bf16.msra.mxu0 %v1685_v38 }
  0x97   :  { %1551 = vmatprep.subr.bf16.mxu0 %v1982_v37 }
  0x9a   :  { %1552 = vmatpush3.bf16.msra.mxu0 %v1686_v39 }
  0x9b   :  { %1553 = vmatprep.subr.bf16.mxu0 %v1982_v37 }
  0x9e   :  { %1554 = vmatpush3.bf16.msra.mxu0 %v1687_v40 }
  0x9f   :  { %1555 = vmatprep.subr.bf16.mxu0 %v1982_v37 }
  0xa2   :  { %1556 = vmatpush3.bf16.msra.mxu0 %v1688_v3  ;;  %v1713_v3 = vld [vmem:[#allocation13 + $0x10] sm:$0xff]  }
  0xa3   :  { %1557 = vmatprep.subr.bf16.mxu0 %v1982_v37 }
  0xa6   :  { %1558 = vmatpush3.bf16.msra.mxu0 %v1689_v4  ;;  %v1714_v4 = vld [vmem:[#allocation13 + $0x8] sm:$0xff]  }
  0xa7   :  { %1559 = vmatprep.subr.bf16.mxu0 %v1982_v37 }
  0xaa   :  { %1560 = vmatpush3.bf16.msra.mxu0 %v1690_v5  ;;  %v1715_v5 = vld [vmem:[#allocation13] sm:$0xff]  }
  0xab   :  { %1561 = vmatprep.subr.bf16.mxu0 %v1982_v37 }
  0xae   :  { %1562 = vmatpush3.bf16.msra.mxu0 %v1691_v6  ;;  %v1716_v6 = vld [vmem:[#allocation14 + $0x70] ss:$8 sps:$4 sm:$0xff]  }
  0xaf   :  { %1587 = vmatprep.subr.bf16.mxu0 %v1982_v37 }
 0x151   :  { %v325_v48 = vpop.f32.mrf.mxu0 }
 0x152   :  { %v326_v51 = vadd.f32 %v325_v48, %v204_v47 }
 0x153   :  { %v327_v49 = vpop.f32.mrf.mxu0 }
 0x154   :  { %v328_v50 = vadd.f32 %v327_v49, %v208_v46  ;;  %v338_v58 = vmul.f32 0.01, %v326_v51  ;;  %vm334_vm2 = vcmp.gt.f32.partialorder %v326_v51, 0.0 }
 0x155   :  { %v329_v52 = vpop.f32.mrf.mxu0 }
 0x156   :  { %v330_v53 = vadd.f32 %v329_v52, %v204_v47  ;;  %v339_v55 = vmul.f32 0.01, %v328_v50  ;;  %vm335_vm1 = vcmp.gt.f32.partialorder %v328_v50, 0.0  ;;  %v342_v1 = vsel %vm334_vm2, %v326_v51, %v338_v58  ;;  %v1706_v51 = vld [vmem:[#allocation11 + $0x8] sm:$0xff]   ;;  %v1707_v52 = vld [vmem:[#allocation11] sm:$0xff]  }
 0x157   :  { %v331_v54 = vpop.f32.mrf.mxu0 }
 0x158   :  { %vm336_vm0 = vcmp.gt.f32.partialorder %v330_v53, 0.0  ;;  %v340_v56 = vmul.f32 0.01, %v330_v53  ;;  %v332_v57 = vadd.f32 %v331_v54, %v208_v46  ;;  %v343_v61 = vsel %vm335_vm1, %v328_v50, %v339_v55  ;;  %v1709_v54 = vld [vmem:[#allocation13 + $0x30] sm:$0xff]   ;;  %v1710_v55 = vld [vmem:[#allocation13 + $0x28] sm:$0xff]  }
 0x15a   :  { %v341_v59 = vmul.f32 0.01, %v332_v57  ;;  %vm337_vm3 = vcmp.gt.f32.partialorder %v332_v57, 0.0  ;;  %v344_v60 = vsel %vm336_vm0, %v330_v53, %v340_v56  ;;  %v1708_v53 = vld [vmem:[#allocation13 + $0x38] sm:$0xff]   ;;  %v1711_v56 = vld [vmem:[#allocation13 + $0x20] sm:$0xff]  }
 0x15b   :  { %v379_v2 = vpack.c.bf16 %v344_v60, %v342_v1 }
 0x15c   :  { %v345_v62 = vsel %vm337_vm3, %v332_v57, %v341_v59  ;;  %v1712_v57 = vld [vmem:[#allocation13 + $0x18] sm:$0xff]   ;;  %v1407_v59 = vld [vmem:[%s2221_s8] ss:$0 sm:$0xff] }
 0x15d   :  { %v380_v63 = vpack.c.bf16 %v345_v62, %v343_v61 }
 0x15f   :  { %515 = vmatprep.mubr.bf16.mxu1 %v380_v63 }
 0x160   :  { %516 = vmatmul.mubr.bf16.vlgmr.msra.gmra.mxu1 %v379_v2 }
 0x161   :  { %1583 = vmatprep.mubr.msk.bf16.mxu1 %vm1983_vm4, %v1982_v37  ;;  %1568 = vmatpush3.bf16.msra.mxu1 %v1692_v7  ;;  %v1718_v7 = vld [vmem:[#allocation14 + $0x74] ss:$8 sps:$4 sm:$0xff]  }
 0x162   :  { %1569 = vmatprep.subr.bf16.mxu1 %v1982_v37 }
 0x165   :  { %1570 = vmatpush3.bf16.msra.mxu1 %v1693_v8  ;;  %v1721_v8 = vld [vmem:[#allocation14 + $0x64] ss:$8 sps:$4 sm:$0xff]  }
 0x166   :  { %1571 = vmatprep.subr.bf16.mxu1 %v1982_v37 }
 0x169   :  { %1572 = vmatpush3.bf16.msra.mxu1 %v1694_v9  ;;  %v1719_v9 = vld [vmem:[#allocation14 + $0x60] ss:$8 sps:$4 sm:$0xff]  }
 0x16a   :  { %1573 = vmatprep.subr.bf16.mxu1 %v1982_v37 }
 0x16d   :  { %1574 = vmatpush3.bf16.msra.mxu1 %v1695_v10  ;;  %v1724_v10 = vld [vmem:[#allocation14 + $0x54] ss:$8 sps:$4 sm:$0xff]  }
 0x16e   :  { %1575 = vmatprep.subr.bf16.mxu1 %v1982_v37 }
 0x171   :  { %1576 = vmatpush3.bf16.msra.mxu1 %v1696_v11  ;;  %v1727_v11 = vld [vmem:[#allocation14 + $0x44] ss:$8 sps:$4 sm:$0xff]  }
 0x172   :  { %1577 = vmatprep.subr.bf16.mxu1 %v1982_v37 }
 0x175   :  { %1578 = vmatpush3.bf16.msra.mxu1 %v1697_v26  ;;  %v1733_v26 = vld [vmem:[#allocation14 + $0x24] ss:$8 sps:$4 sm:$0xff]  }
 0x176   :  { %1579 = vmatprep.subr.bf16.mxu1 %v1982_v37 }
 0x179   :  { %1580 = vmatpush3.bf16.msra.mxu1 %v1698_v27  ;;  %v1731_v27 = vld [vmem:[#allocation14 + $0x20] ss:$8 sps:$4 sm:$0xff]  }
 0x17a   :  { %1581 = vmatprep.subr.bf16.mxu1 %v1982_v37 }
 0x17d   :  { %1582 = vmatpush3.bf16.msra.mxu1 %v1699_v28  ;;  %v1736_v28 = vld [vmem:[#allocation14 + $0x14] ss:$8 sps:$4 sm:$0xff]  }
 0x17e   :  { %1607 = vmatprep.subr.bf16.mxu1 %v1982_v37 }
 0x220   :  { %v1483_v12 = vpop.f32.mrf.mxu1 }
 0x222   :  { %v1484_v14 = vpop.f32.mrf.mxu1 }
 0x223   :  { %v1485_v15 = vadd.f32 %v1484_v14, %v1483_v12  ;;  %v1725_v12 = vld [vmem:[#allocation14 + $0x40] ss:$8 sps:$4 sm:$0xff]   ;;  %v1416_v14 = vld [vmem:[%s2223_s10] ss:$0 sm:$0xff] }
 0x224   :  { %v1486_v16 = vpop.f32.mrf.mxu1 }
 0x225   :  { %v518_v17 = vadd.f32 %v1485_v15, %v1381_v13 }
 0x226   :  { %v1487_v18 = vpop.f32.mrf.mxu1 }
 0x227   :  { %v1488_v19 = vadd.f32 %v1487_v18, %v1486_v16  ;;  %v526_v20 = vmul.f32 0.01, %v518_v17  ;;  %vm524_vm5 = vcmp.gt.f32.partialorder %v518_v17, 0.0 }
 0x229   :  { %v521_v21 = vadd.f32 %v1488_v19, %v1381_v13  ;;  %v528_v23 = vsel %vm524_vm5, %v518_v17, %v526_v20  ;;  %v1730_v13 = vld [vmem:[#allocation14 + $0x34] ss:$8 sps:$4 sm:$0xff]  }
 0x22b   :  { %vm525_vm6 = vcmp.gt.f32.partialorder %v521_v21, 0.0  ;;  %v527_v22 = vmul.f32 0.01, %v521_v21 }
 0x22d   :  { %v529_v24 = vsel %vm525_vm6, %v521_v21, %v527_v22 }
 0x22e   :  { %v547_v25 = vpack.c.bf16 %v529_v24, %v528_v23 }
 0x230   :  { %1564 = vmatmul.mubr.bf16.vlgmr.msra.gmra.mxu0 %v547_v25 }
 0x231   :  { %1603 = vmatprep.mubr.msk.bf16.mxu0 %vm1983_vm4, %v1982_v37  ;;  %1588 = vmatpush3.bf16.msra.mxu0 %v1700_v29  ;;  %v1734_v29 = vld [vmem:[#allocation14 + $0x10] ss:$8 sps:$4 sm:$0xff]  }
 0x232   :  { %1589 = vmatprep.subr.bf16.mxu0 %v1982_v37 }
 0x235   :  { %1590 = vmatpush3.bf16.msra.mxu0 %v1701_v30  ;;  %v1739_v30 = vld [vmem:[#allocation14 + $0x4] ss:$8 sps:$4 sm:$0xff]  }
 0x236   :  { %1591 = vmatprep.subr.bf16.mxu0 %v1982_v37 }
 0x239   :  { %1592 = vmatpush3.bf16.msra.mxu0 %v1702_v31  ;;  %v1737_v31 = vld [vmem:[#allocation14] ss:$8 sps:$4 sm:$0xff]  }
 0x23a   :  { %1593 = vmatprep.subr.bf16.mxu0 %v1982_v37 }
 0x23d   :  { %1594 = vmatpush3.bf16.msra.mxu0 %v1703_v32  ;;  %v1740_v32 = vld [vmem:[#allocation16 + $0x78] sm:$0xff]  }
 0x23e   :  { %1595 = vmatprep.subr.bf16.mxu0 %v1982_v37 }
 0x241   :  { %1596 = vmatpush3.bf16.msra.mxu0 %v1704_v33  ;;  %v1741_v33 = vld [vmem:[#allocation16 + $0x38] sm:$0xff]  }
 0x242   :  { %1597 = vmatprep.subr.bf16.mxu0 %v1982_v37 }
 0x245   :  { %1598 = vmatpush3.bf16.msra.mxu0 %v1705_v34  ;;  %v1742_v34 = vld [vmem:[#allocation16 + $0x70] sm:$0xff]  }
 0x246   :  { %1599 = vmatprep.subr.bf16.mxu0 %v1982_v37 }
 0x249   :  { %1600 = vmatpush3.bf16.msra.mxu0 %v1706_v51 }
 0x24a   :  { %1601 = vmatprep.subr.bf16.mxu0 %v1982_v37 }
 0x24d   :  { %1602 = vmatpush3.bf16.msra.mxu0 %v1707_v52 }
 0x24e   :  { %1109 = vmatprep.subr.bf16.mxu0 %v1718_v7 }
 0x2f0   :  { %v636_v36 = vpop.f32.mrf.mxu0 }
 0x2f1   :  { %v637_v38 = vadd.f32 %v1398_v35, %v636_v36  ;;  %v1744_v36 = vld [vmem:[#allocation16 + $0x68] sm:$0xff]  }
 0x2f2   :  { %v1565_v39 = vpop.f32.mrf.mxu0 }
 0x2f3   :  { %v645_v41 = vmul.f32 0.01, %v637_v38  ;;  %vm643_vm7 = vcmp.gt.f32.partialorder %v637_v38, 0.0  ;;  %v1746_v39 = vld [vmem:[#allocation16 + $0x60] sm:$0xff]  }
 0x2f4   :  { %v639_v40 = vpop.f32.mrf.mxu0 }
 0x2f5   :  { %v640_v45 = vadd.f32 %v1398_v35, %v639_v40  ;;  %v647_v48 = vsel %vm643_vm7, %v637_v38, %v645_v41  ;;  %v1743_v35 = vld [vmem:[#allocation16 + $0x30] sm:$0xff]   ;;  %v1745_v38 = vld [vmem:[#allocation16 + $0x28] sm:$0xff]   ;;  %v1747_v40 = vld [vmem:[#allocation16 + $0x20] sm:$0xff]  }
 0x2f6   :  { %v1566_v46 = vpop.f32.mrf.mxu0  ;;  %v1748_v41 = vld [vmem:[#allocation16 + $0x58] sm:$0xff]  }
 0x2f7   :  { %vm644_vm8 = vcmp.gt.f32.partialorder %v640_v45, 0.0  ;;  %v646_v47 = vmul.f32 0.01, %v640_v45 }
 0x2f9   :  { %v648_v49 = vsel %vm644_vm8, %v640_v45, %v646_v47  ;;  %v1425_v45 = vld [vmem:[%s2225_s12] ss:$0 sm:$0xff] }
 0x2fa   :  { %v666_v50 = vpack.c.bf16 %v648_v49, %v647_v48 }
 0x2fc   :  { %1584 = vmatmul.mubr.bf16.vlgmr.msra.gmra.mxu1 %v666_v50 }
 0x2fd   :  { %1623 = vmatprep.mubr.msk.bf16.mxu1 %vm1983_vm4, %v1982_v37  ;;  %1608 = vmatpush3.bf16.msra.mxu1 %v1708_v53 }
 0x2fe   :  { %1609 = vmatprep.subr.bf16.mxu1 %v1982_v37 }
 0x301   :  { %1610 = vmatpush3.bf16.msra.mxu1 %v1709_v54 }
 0x302   :  { %1611 = vmatprep.subr.bf16.mxu1 %v1982_v37 }
 0x305   :  { %1612 = vmatpush3.bf16.msra.mxu1 %v1710_v55 }
 0x306   :  { %1613 = vmatprep.subr.bf16.mxu1 %v1982_v37 }
 0x309   :  { %1614 = vmatpush3.bf16.msra.mxu1 %v1711_v56 }
 0x30a   :  { %1615 = vmatprep.subr.bf16.mxu1 %v1982_v37 }
 0x30d   :  { %1616 = vmatpush3.bf16.msra.mxu1 %v1712_v57  ;;  %v1749_v57 = vld [vmem:[#allocation16 + $0x18] sm:$0xff]  }
 0x30e   :  { %1617 = vmatprep.subr.bf16.mxu1 %v1982_v37 }
 0x311   :  { %1618 = vmatpush3.bf16.msra.mxu1 %v1713_v3 }
 0x312   :  { %1619 = vmatprep.subr.bf16.mxu1 %v1982_v37 }
 0x315   :  { %1620 = vmatpush3.bf16.msra.mxu1 %v1714_v4 }
 0x316   :  { %1621 = vmatprep.subr.bf16.mxu1 %v1982_v37  ;;  %v1728_v37 = vld [vmem:[#allocation14 + $0x30] ss:$8 sps:$4 sm:$0xff]  }
 0x319   :  { %1622 = vmatpush3.bf16.msra.mxu1 %v1715_v5 }
 0x31a   :  { %1525 = vmatprep.subr.bf16.mxu1 %v1740_v32 }
 0x3bc   :  { %v755_v58 = vpop.f32.mrf.mxu1 }
 0x3bd   :  { %v756_v62 = vadd.f32 %v1407_v59, %v755_v58  ;;  %v1750_v58 = vld [vmem:[#allocation16 + $0x50] sm:$0xff]  }
 0x3be   :  { %v1585_v60 = vpop.f32.mrf.mxu1 }
 0x3bf   :  { %v1752_v60 = vld [vmem:[#allocation16 + $0x48] sm:$0xff]  }
 0x3c0   :  { %v758_v61 = vpop.f32.mrf.mxu1 }
 0x3c1   :  { %v759_v63 = vadd.f32 %v1407_v59, %v758_v61  ;;  %v1751_v59 = vld [vmem:[#allocation16 + $0x10] sm:$0xff]   ;;  %v1753_v61 = vld [vmem:[#allocation16 + $0x8] sm:$0xff]  }
 0x3c2   :  { %v1586_v1 = vpop.f32.mrf.mxu1 }
 0x3c3   :  { %v779_v2 = vpack.c.bf16 %v759_v63, %v756_v62  ;;  %v1754_v62 = vld [vmem:[#allocation16 + $0x40] sm:$0xff]   ;;  %v1016_v1 = vld [vmem:[%s2227_s14] sm:$0x3] }
 0x3c4   :  { %v1755_v63 = vld [vmem:[#allocation16] sm:$0xff]   ;;  %v1022_v3 = vrot.slane %v1016_v1, %v203_v44 }
 0x3c5   :  { %1604 = vmatmul.mubr.bf16.vlgmr.msra.gmra.mxu0 %v779_v2  ;;  %v1026_v2 = vrot.slane %v1016_v1, %v207_v43 }
 0x3c6   :  { %1141 = vmatprep.mubr.bf16.mxu0 %v1981_v0  ;;  %1110 = vmatpush1.bf16.msra.mxu0 %v1716_v6  ;;  %v1722_v0 = vld [vmem:[#allocation14 + $0x50] ss:$8 sps:$4 sm:$0xff]  }
 0x3c7   :  { %1111 = vmatprep.subr.bf16.mxu0 %v1721_v8 }
 0x3ca   :  { %1112 = vmatpush1.bf16.msra.mxu0 %v1719_v9 }
 0x3cb   :  { %1113 = vmatprep.subr.bf16.mxu0 %v1724_v10 }
 0x3ce   :  { %1114 = vmatpush1.bf16.msra.mxu0 %v1722_v0 }
 0x3cf   :  { %1115 = vmatprep.subr.bf16.mxu0 %v1727_v11 }
 0x3d2   :  { %1116 = vmatpush1.bf16.msra.mxu0 %v1725_v12 }
 0x3d3   :  { %1117 = vmatprep.subr.bf16.mxu0 %v1730_v13 }
 0x3d6   :  { %1118 = vmatpush1.bf16.msra.mxu0 %v1728_v37 }
 0x3d7   :  { %1119 = vmatprep.subr.bf16.mxu0 %v1733_v26 }
 0x3da   :  { %1120 = vmatpush1.bf16.msra.mxu0 %v1731_v27 }
 0x3db   :  { %1121 = vmatprep.subr.bf16.mxu0 %v1736_v28 }
 0x3de   :  { %1122 = vmatpush1.bf16.msra.mxu0 %v1734_v29 }
 0x3df   :  { %1123 = vmatprep.subr.bf16.mxu0 %v1739_v30 }
 0x3e2   :  { %1124 = vmatpush1.bf16.msra.mxu0 %v1737_v31 }
 0x485   :  { %v868_v15 = vpop.f32.mrf.mxu0 }
 0x486   :  { %v869_v16 = vadd.f32 %v1416_v14, %v868_v15 }
 0x487   :  { %v1605_v17 = vpop.f32.mrf.mxu0 }
 0x488   :  { %v877_v19 = vmul.f32 0.01, %v869_v16  ;;  %vm875_vm9 = vcmp.gt.f32.partialorder %v869_v16, 0.0 }
 0x489   :  { %v871_v18 = vpop.f32.mrf.mxu0 }
 0x48a   :  { %v872_v20 = vadd.f32 %v1416_v14, %v871_v18  ;;  %v879_v23 = vsel %vm875_vm9, %v869_v16, %v877_v19  ;;  %v1450_v18 = vld [vmem:[%s2229_s16] ss:$0 sm:$0xff] }
 0x48b   :  { %v1606_v21 = vpop.f32.mrf.mxu0 }
 0x48c   :  { %vm876_vm10 = vcmp.gt.f32.partialorder %v872_v20, 0.0  ;;  %v878_v22 = vmul.f32 0.01, %v872_v20 }
 0x48e   :  { %v880_v24 = vsel %vm876_vm10, %v872_v20, %v878_v22 }
 0x48f   :  { %v898_v25 = vpack.c.bf16 %v880_v24, %v879_v23 }
 0x491   :  { %1624 = vmatmul.mubr.bf16.vlgmr.msra.gmra.mxu1 %v898_v25 }
 0x492   :  { %1526 = vmatpush3.bf16.msra.mxu1 %v1741_v33 }
 0x493   :  { %1527 = vmatprep.subr.bf16.mxu1 %v1742_v34 }
 0x496   :  { %1528 = vmatpush3.bf16.msra.mxu1 %v1743_v35 }
 0x497   :  { %1529 = vmatprep.subr.bf16.mxu1 %v1744_v36 }
 0x49a   :  { %1530 = vmatpush3.bf16.msra.mxu1 %v1745_v38 }
 0x49b   :  { %1531 = vmatprep.subr.bf16.mxu1 %v1746_v39 }
 0x49e   :  { %1532 = vmatpush3.bf16.msra.mxu1 %v1747_v40 }
 0x49f   :  { %1533 = vmatprep.subr.bf16.mxu1 %v1748_v41 }
 0x4a2   :  { %1534 = vmatpush3.bf16.msra.mxu1 %v1749_v57 }
 0x4a3   :  { %1535 = vmatprep.subr.bf16.mxu1 %v1750_v58 }
 0x4a6   :  { %1536 = vmatpush3.bf16.msra.mxu1 %v1751_v59 }
 0x4a7   :  { %1537 = vmatprep.subr.bf16.mxu1 %v1752_v60 }
 0x4aa   :  { %1538 = vmatpush3.bf16.msra.mxu1 %v1753_v61 }
 0x4ab   :  { %1539 = vmatprep.subr.bf16.mxu1 %v1754_v62 }
 0x4ae   :  { %1540 = vmatpush3.bf16.msra.mxu1 %v1755_v63 }
 0x551   :  { %v987_v46 = vpop.f32.mrf.mxu1 }
 0x552   :  { %v988_v47 = vadd.f32 %v1425_v45, %v987_v46 }
 0x553   :  { %v1625_v48 = vpop.f32.mrf.mxu1 }
 0x554   :  { %v996_v50 = vmul.f32 0.01, %v988_v47  ;;  %vm994_vm11 = vcmp.gt.f32.partialorder %v988_v47, 0.0 }
 0x555   :  { %v990_v49 = vpop.f32.mrf.mxu1 }
 0x556   :  { %v991_v51 = vadd.f32 %v1425_v45, %v990_v49  ;;  %v998_v54 = vsel %vm994_vm11, %v988_v47, %v996_v50 }
 0x557   :  { %v1626_v52 = vpop.f32.mrf.mxu1 }
 0x558   :  { %vm995_vm12 = vcmp.gt.f32.partialorder %v991_v51, 0.0  ;;  %v997_v53 = vmul.f32 0.01, %v991_v51 }
 0x55a   :  { %v999_v55 = vsel %vm995_vm12, %v991_v51, %v997_v53 }
 0x55b   :  { %v1017_v56 = vpack.c.bf16 %v999_v55, %v998_v54 }
 0x55d   :  { %1142 = vmatmul.mubr.bf16.vlgmr.msra.gmra.mxu0 %v1017_v56 }
 0x61d   :  { %v1143_v4 = vpop.f32.mrf.mxu0 }
 0x61e   :  { %v1144_v7 = vadd.f32 %v1143_v4, %v1022_v3 }
 0x61f   :  { %v1145_v5 = vpop.f32.mrf.mxu0 }
 0x620   :  { %v1146_v6 = vadd.f32 %v1145_v5, %v1026_v2  ;;  %v1156_v13 = vmul.f32 0.01, %v1144_v7  ;;  %vm1152_vm15 = vcmp.gt.f32.partialorder %v1144_v7, 0.0 }
 0x621   :  { %v1147_v8 = vpop.f32.mrf.mxu0 }
 0x622   :  { %v1148_v9 = vadd.f32 %v1147_v8, %v1022_v3  ;;  %v1157_v0 = vmul.f32 0.01, %v1146_v6  ;;  %vm1153_vm14 = vcmp.gt.f32.partialorder %v1146_v6, 0.0  ;;  %v1160_v44 = vsel %vm1152_vm15, %v1144_v7, %v1156_v13 }
 0x623   :  { %v1149_v10 = vpop.f32.mrf.mxu0 }
 0x624   :  { %vm1154_vm13 = vcmp.gt.f32.partialorder %v1148_v9, 0.0  ;;  %v1158_v11 = vmul.f32 0.01, %v1148_v9  ;;  %v1150_v12 = vadd.f32 %v1149_v10, %v1026_v2  ;;  %v1161_v14 = vsel %vm1153_vm14, %v1146_v6, %v1157_v0 }
 0x626   :  { %vm1155_vm0 = vcmp.gt.f32.partialorder %v1150_v12, 0.0  ;;  %v1159_v37 = vmul.f32 0.01, %v1150_v12  ;;  %v1162_v43 = vsel %vm1154_vm13, %v1148_v9, %v1158_v11 }
 0x627   :  { %v1197_v16 = vpack.c.bf16 %v1162_v43, %v1160_v44 }
 0x628   :  { %v1163_v42 = vsel %vm1155_vm0, %v1150_v12, %v1159_v37 }
 0x629   :  { %v1198_v15 = vpack.c.bf16 %v1163_v42, %v1161_v14 }
 0x62b   :  { %1333 = vmatprep.mubr.bf16.mxu1 %v1198_v15 }
 0x62c   :  { %1334 = vmatmul.mubr.bf16.vlgmr.msra.gmra.mxu1 %v1197_v16 }
 0x6ec   :  { %v1541_v17 = vpop.f32.mrf.mxu1 }
 0x6ee   :  { %v1542_v19 = vpop.f32.mrf.mxu1 }
 0x6ef   :  { %v1543_v20 = vadd.f32 %v1542_v19, %v1541_v17 }
 0x6f0   :  { %v1544_v21 = vpop.f32.mrf.mxu1 }
 0x6f1   :  { %v1336_v22 = vadd.f32 %v1543_v20, %v1450_v18 }
 0x6f2   :  { %v1545_v23 = vpop.f32.mrf.mxu1 }
 0x6f3   :  { %1342 = vst [vmem:[#allocation17] sm:$0xff] %v1336_v22  ;;  %v1546_v24 = vadd.f32 %v1545_v23, %v1544_v21 }
 0x6f5   :  { %v1339_v25 = vadd.f32 %v1546_v24, %v1450_v18 }
 0x6f7   :  { %1343 = vst [vmem:[#allocation17 + $0x8] sm:$0xff] %v1339_v25 }
 0x6f8   :  { %1947 = shalt.err (!%p1944_p7)
}
 0x6f9   :  { %1355 = dma.vmem_to_hbm [thread:$0]  %s1350_s9, 256, %s2230_s17, [#allocation4], %s1969_s27, %s1969_s27, %s1970_s28  }
 0x6fa   :  { %1966 = dma.done.wait [#allocation4], 256  }
 0x6fb   :  { %1967 = vsyncadd [#allocation4], 4294967040 }
 0x6fc   :  { %1359 = vsyncpa [#allocation3], 1 }
 0x6fd   :  { %1360 = vsyncpa [#allocation6], 1 }
 0x6fe   :  { %1361 = vsyncpa [#allocation9], 1 }
 0x6ff   :  { %1362 = vsyncpa [#allocation12], 1 }
 0x700   :  { %1363 = vsyncpa [#allocation15], 1 }
 0x701   :  { %1364 = vsyncpa [#allocation4], 1 }

</bundles_post_ra>
